<compile_context>
chip_gen: v5e
topology: v5e:2x2
jax: 0.10.0
libtpu: 0.0.40
codegen_flags: <defaults>
</compile_context>

<pallas_src>
import functools

import jax
import jax.numpy as jnp
from jax.experimental import pallas as pl
from jax.experimental.pallas import tpu as pltpu

_STAT_LANES = 128  # lane-dense width for running max / denom scratch


def _attend_fwd_kernel(q_ref, k_ref, v_ref, o_ref, m_sc, l_sc, acc_sc, *, scale):
    # Refs (the bh block dim is squeezed out by the leading `None` in BlockSpec):
    #   q_ref: (block_q, d)   k_ref/v_ref: (block_k, d)   o_ref: (block_q, d)
    #   m_sc/l_sc: (block_q, 128) lane-replicated stats   acc_sc: (block_q, d) f32
    ki = pl.program_id(2)
    block_k = k_ref.shape[0]
    d = acc_sc.shape[-1]
    lanes = m_sc.shape[-1]

    @pl.when(ki == 0)
    def _init():
        m_sc[...] = jnp.full(m_sc.shape, -jnp.inf, jnp.float32)
        l_sc[...] = jnp.zeros(l_sc.shape, jnp.float32)
        acc_sc[...] = jnp.zeros(acc_sc.shape, jnp.float32)

    # Scale q once per (tq x d) tile instead of s every (tq x tk) kv step.
    q = q_ref[...] * jnp.asarray(scale, dtype=q_ref.dtype)

    # Scores for this (q-tile, kv-tile): (tq, tk); MXU at input dtype, f32 acc.
    s = jnp.einsum("qd,kd->qk", q, k_ref[...],
                   preferred_element_type=jnp.float32)

    m_prev = m_sc[...]                                       # (tq, lanes)
    m_next = jnp.maximum(m_prev, jnp.max(s, axis=-1, keepdims=True))
    alpha = jnp.exp(m_prev - m_next)                         # rescale of prior partials

    if block_k % lanes == 0:
        reps = block_k // lanes
        m_b = m_next if reps == 1 else jnp.tile(m_next, (1, reps))
    else:
        m_b = m_next[:, :1]
    p = jnp.exp(s - m_b)                                     # un-normalized probs, f32

    l_sc[...] = alpha * l_sc[...] + jnp.sum(p, axis=-1, keepdims=True)

    alpha_o = alpha if d == lanes else alpha[:, :1]
    acc_sc[...] = alpha_o * acc_sc[...] + jnp.dot(
        p.astype(v_ref.dtype), v_ref[...], preferred_element_type=jnp.float32)
    m_sc[...] = m_next

    @pl.when(ki == pl.num_programs(2) - 1)
    def _finalize():
        l = l_sc[...]
        if o_ref.dtype == jnp.float32:
            inv = pl.reciprocal(l, approx=False)   # exact: f32 output accuracy
        else:
            inv = pl.reciprocal(l, approx=True)    # EUP slot, ~free; fine for bf16
        inv_o = inv if d == lanes else inv[:, :1]
        o_ref[...] = (acc_sc[...] * inv_o).astype(o_ref.dtype)


def attend_forward(q, k, v, *, scale=None, block_q=256, block_k=256,
                   vmem_limit_bytes=32 * 1024 * 1024):
    """Pallas TPU forward for Attend (flash=False math path, dropout=0.0).

    q, k, v: (batch, heads, seq, dim_head); k and v share their sequence length.
    """
    b, h, q_len, d = q.shape
    kb, kh, k_len, kd = k.shape
    assert (kb, kh, kd) == (b, h, d) and v.shape == k.shape
    if scale is None:
        scale = d ** -0.5

    bh = b * h
    # Pure reshapes (no transposes): heads fold into the leading grid axis,
    # dim_head stays the minor/lane axis.
    qf = q.reshape(bh, q_len, d)
    kf = k.reshape(bh, k_len, d)
    vf = v.reshape(bh, k_len, d)

    block_q = min(block_q, q_len)
    block_k = min(block_k, k_len)
    assert q_len % block_q == 0, (q_len, block_q)
    assert k_len % block_k == 0, (k_len, block_k)
    grid = (bh, q_len // block_q, k_len // block_k)

    out = pl.pallas_call(
        functools.partial(_attend_fwd_kernel, scale=float(scale)),
        out_shape=jax.ShapeDtypeStruct((bh, q_len, d), q.dtype),
        grid_spec=pltpu.PrefetchScalarGridSpec(
            num_scalar_prefetch=0,
            grid=grid,
            in_specs=[
                pl.BlockSpec((None, block_q, d), lambda bi, qi, ki: (bi, qi, 0)),
                pl.BlockSpec((None, block_k, d), lambda bi, qi, ki: (bi, ki, 0)),
                pl.BlockSpec((None, block_k, d), lambda bi, qi, ki: (bi, ki, 0)),
            ],
            out_specs=pl.BlockSpec((None, block_q, d),
                                   lambda bi, qi, ki: (bi, qi, 0)),
            scratch_shapes=[
                pltpu.VMEM((block_q, _STAT_LANES), jnp.float32),  # running max m
                pltpu.VMEM((block_q, _STAT_LANES), jnp.float32),  # running denom l
                pltpu.VMEM((block_q, d), jnp.float32),            # f32 output acc
            ],
        ),
        compiler_params=pltpu.CompilerParams(
            dimension_semantics=("parallel", "parallel", "arbitrary"),
            vmem_limit_bytes=vmem_limit_bytes),
    )(qf, kf, vf)

    return out.reshape(b, h, q_len, d)


# ---------------------------------------------------------------------------
# Pure-JAX reference (mirrors the PyTorch non-flash forward, math in f32)
# ---------------------------------------------------------------------------
def _reference(q, k, v, scale=None):
    q, k, v = (t.astype(jnp.float32) for t in (q, k, v))
    d = q.shape[-1]
    scale = d ** -0.5 if scale is None else scale
    sim = jnp.einsum("bhid,bhjd->bhij", q, k) * scale
    attn = jax.nn.softmax(sim, axis=-1)
    return jnp.einsum("bhij,bhjd->bhid", attn, v)


if __name__ == "__main__":
    # Lane-dense dim_head=128; seq=512 gives a (bh=8, 2, 2) grid so the
    # accumulator init/finalize path, pipelining and parallel axes are all
    # exercised.  bf16 inputs hit the fast MXU path on v6e/v7x.
    b, heads, seq, dim_head = 2, 4, 512, 128

    key = jax.random.PRNGKey(0)
    kq, kk, kv = jax.random.split(key, 3)
    q = jax.random.normal(kq, (b, heads, seq, dim_head), jnp.float32).astype(jnp.bfloat16)
    k = jax.random.normal(kk, (b, heads, seq, dim_head), jnp.float32).astype(jnp.bfloat16)
    v = jax.random.normal(kv, (b, heads, seq, dim_head), jnp.float32).astype(jnp.bfloat16)

    fwd = jax.jit(attend_forward)
    out = jax.block_until_ready(fwd(q, k, v))

    ref = _reference(q, k, v)
    assert out.shape == (b, heads, seq, dim_head), out.shape
    out_f32 = out.astype(jnp.float32)
    err = float(jnp.max(jnp.abs(out_f32 - ref)))
    assert jnp.allclose(out_f32, ref, rtol=2e-2, atol=2e-2), err

    # TODO(synk): attn_dropout with p>0 (training mode) and the CUDA flash
    # config selection are host-side no-ops here; only the eval/p=0 math
    # path is implemented.
    print("KERNEL_OK")
</pallas_src>

<mosaic_0001>
module attributes {stable_mosaic.version = 11 : i64} {
  func.func @_attend_fwd_kernel(%arg0: i32, %arg1: i32, %arg2: i32, %arg3: memref<1x256x128xbf16, #tpu.memory_space<vmem>>, %arg4: memref<1x256x128xbf16, #tpu.memory_space<vmem>>, %arg5: memref<1x256x128xbf16, #tpu.memory_space<vmem>>, %arg6: memref<1x256x128xbf16, #tpu.memory_space<vmem>>, %arg7: memref<256x128xf32, #tpu.memory_space<vmem>>, %arg8: memref<256x128xf32, #tpu.memory_space<vmem>>, %arg9: memref<256x128xf32, #tpu.memory_space<vmem>>) attributes {dimension_semantics = [#tpu.dimension_semantics<parallel>, #tpu.dimension_semantics<parallel>, #tpu.dimension_semantics<arbitrary>], iteration_bounds = array<i64: 8, 2, 2>, scalar_prefetch = 0 : i64, scratch_operands = 3 : i64, tpu.core_type = #tpu.core_type<tc>, window_params = [{transform_indices = @transform_0, window_bounds = array<i64: 1, 256, 128>}, {transform_indices = @transform_1, window_bounds = array<i64: 1, 256, 128>}, {transform_indices = @transform_2, window_bounds = array<i64: 1, 256, 128>}, {transform_indices = @transform_3, window_bounds = array<i64: 1, 256, 128>}]} {
    %c0_i32 = arith.constant 0 : i32
    %0 = arith.cmpi eq, %arg2, %c0_i32 : i32
    %1 = arith.extui %0 : i1 to i32
    %c0_i32_0 = arith.constant 0 : i32
    %2 = arith.cmpi ne, %1, %c0_i32_0 : i32
    scf.if %2 {
      %cst_26 = arith.constant 0xFF800000 : f32
      %39 = vector.broadcast %cst_26 : f32 to vector<256x128xf32>
      %c0_27 = arith.constant 0 : index
      %c0_28 = arith.constant 0 : index
      %40 = vector.load %arg7[%c0_27, %c0_28] : memref<256x128xf32, #tpu.memory_space<vmem>>, vector<256x128xf32>
      tpu.vector_store %arg7[%c0_27, %c0_28], %39 {strides = array<i32>} : memref<256x128xf32, #tpu.memory_space<vmem>>, vector<256x128xf32>,
      %cst_29 = arith.constant 0.000000e+00 : f32
      %41 = vector.broadcast %cst_29 : f32 to vector<256x128xf32>
      %c0_30 = arith.constant 0 : index
      %c0_31 = arith.constant 0 : index
      %42 = vector.load %arg8[%c0_30, %c0_31] : memref<256x128xf32, #tpu.memory_space<vmem>>, vector<256x128xf32>
      tpu.vector_store %arg8[%c0_30, %c0_31], %41 {strides = array<i32>} : memref<256x128xf32, #tpu.memory_space<vmem>>, vector<256x128xf32>,
      %cst_32 = arith.constant 0.000000e+00 : f32
      %43 = vector.broadcast %cst_32 : f32 to vector<256x128xf32>
      %c0_33 = arith.constant 0 : index
      %c0_34 = arith.constant 0 : index
      %44 = vector.load %arg9[%c0_33, %c0_34] : memref<256x128xf32, #tpu.memory_space<vmem>>, vector<256x128xf32>
      tpu.vector_store %arg9[%c0_33, %c0_34], %43 {strides = array<i32>} : memref<256x128xf32, #tpu.memory_space<vmem>>, vector<256x128xf32>,
    } else {
    }
    %c0 = arith.constant 0 : index
    %c0_1 = arith.constant 0 : index
    %c0_2 = arith.constant 0 : index
    %3 = vector.load %arg3[%c0, %c0_1, %c0_2] : memref<1x256x128xbf16, #tpu.memory_space<vmem>>, vector<1x256x128xbf16>
    %4 = vector.shape_cast %3 : vector<1x256x128xbf16> to vector<256x128xbf16>
    %cst = arith.constant 8.837890e-02 : bf16
    %5 = vector.broadcast %cst : bf16 to vector<256x128xbf16>
    %6 = arith.mulf %4, %5 : vector<256x128xbf16>
    %c0_3 = arith.constant 0 : index
    %c0_4 = arith.constant 0 : index
    %c0_5 = arith.constant 0 : index
    %7 = vector.load %arg4[%c0_3, %c0_4, %c0_5] : memref<1x256x128xbf16, #tpu.memory_space<vmem>>, vector<1x256x128xbf16>
    %8 = vector.shape_cast %7 : vector<1x256x128xbf16> to vector<256x128xbf16>
    "tpu.trace_start"() <{level = 10 : i32, message = "qd,kd->qk"}> : () -> ()
    %cst_6 = arith.constant dense<0.000000e+00> : vector<256x256xf32>
    %9 = tpu.matmul %6, %8, %cst_6 {dimension_numbers = #tpu.dot_dimension_numbers<[1], [1], [0], [0], [0, 0, 1, 0], [], []>} : vector<256x128xbf16>, vector<256x128xbf16>, vector<256x256xf32> -> vector<256x256xf32>
    "tpu.trace_stop"() : () -> ()
    %c0_7 = arith.constant 0 : index
    %c0_8 = arith.constant 0 : index
    %10 = vector.load %arg7[%c0_7, %c0_8] : memref<256x128xf32, #tpu.memory_space<vmem>>, vector<256x128xf32>
    %cst_9 = arith.constant dense<0xFF800000> : vector<256xf32>
    %11 = vector.multi_reduction <maximumf>, %9, %cst_9 [1] : vector<256x256xf32> to vector<256xf32>
    %12 = vector.shape_cast %11 : vector<256xf32> to vector<256x1xf32>
    %13 = vector.broadcast %12 : vector<256x1xf32> to vector<256x128xf32>
    %14 = arith.maximumf %10, %13 : vector<256x128xf32>
    %15 = arith.subf %10, %14 : vector<256x128xf32>
    %16 = math.exp %15 : vector<256x128xf32>
    %17 = tpu.concatenate %14, %14 in 1 : vector<256x128xf32>, vector<256x128xf32> -> vector<256x256xf32>
    %18 = arith.subf %9, %17 : vector<256x256xf32>
    %19 = math.exp %18 : vector<256x256xf32>
    %c0_10 = arith.constant 0 : index
    %c0_11 = arith.constant 0 : index
    %20 = vector.load %arg8[%c0_10, %c0_11] : memref<256x128xf32, #tpu.memory_space<vmem>>, vector<256x128xf32>
    %21 = arith.mulf %16, %20 : vector<256x128xf32>
    %cst_12 = arith.constant dense<0.000000e+00> : vector<256xf32>
    %22 = vector.multi_reduction <add>, %19, %cst_12 [1] : vector<256x256xf32> to vector<256xf32>
    %23 = vector.shape_cast %22 : vector<256xf32> to vector<256x1xf32>
    %24 = vector.broadcast %23 : vector<256x1xf32> to vector<256x128xf32>
    %25 = arith.addf %21, %24 : vector<256x128xf32>
    %c0_13 = arith.constant 0 : index
    %c0_14 = arith.constant 0 : index
    %26 = vector.load %arg8[%c0_13, %c0_14] : memref<256x128xf32, #tpu.memory_space<vmem>>, vector<256x128xf32>
    tpu.vector_store %arg8[%c0_13, %c0_14], %25 {strides = array<i32>} : memref<256x128xf32, #tpu.memory_space<vmem>>, vector<256x128xf32>,
    %c0_15 = arith.constant 0 : index
    %c0_16 = arith.constant 0 : index
    %27 = vector.load %arg9[%c0_15, %c0_16] : memref<256x128xf32, #tpu.memory_space<vmem>>, vector<256x128xf32>
    %28 = arith.mulf %16, %27 : vector<256x128xf32>
    %29 = arith.truncf %19 : vector<256x256xf32> to vector<256x256xbf16>
    %c0_17 = arith.constant 0 : index
    %c0_18 = arith.constant 0 : index
    %c0_19 = arith.constant 0 : index
    %30 = vector.load %arg5[%c0_17, %c0_18, %c0_19] : memref<1x256x128xbf16, #tpu.memory_space<vmem>>, vector<1x256x128xbf16>
    %31 = vector.shape_cast %30 : vector<1x256x128xbf16> to vector<256x128xbf16>
    %cst_20 = arith.constant dense<0.000000e+00> : vector<256x128xf32>
    %32 = tpu.matmul %29, %31, %cst_20 {dimension_numbers = #tpu.dot_dimension_numbers<[1], [0], [0], [1], [0, 0, 1, 1], [], []>} : vector<256x256xbf16>, vector<256x128xbf16>, vector<256x128xf32> -> vector<256x128xf32>
    %33 = arith.addf %28, %32 : vector<256x128xf32>
    %c0_21 = arith.constant 0 : index
    %c0_22 = arith.constant 0 : index
    %34 = vector.load %arg9[%c0_21, %c0_22] : memref<256x128xf32, #tpu.memory_space<vmem>>, vector<256x128xf32>
    tpu.vector_store %arg9[%c0_21, %c0_22], %33 {strides = array<i32>} : memref<256x128xf32, #tpu.memory_space<vmem>>, vector<256x128xf32>,
    %c0_23 = arith.constant 0 : index
    %c0_24 = arith.constant 0 : index
    %35 = vector.load %arg7[%c0_23, %c0_24] : memref<256x128xf32, #tpu.memory_space<vmem>>, vector<256x128xf32>
    tpu.vector_store %arg7[%c0_23, %c0_24], %14 {strides = array<i32>} : memref<256x128xf32, #tpu.memory_space<vmem>>, vector<256x128xf32>,
    %c1_i32 = arith.constant 1 : i32
    %36 = arith.cmpi eq, %arg2, %c1_i32 : i32
    %37 = arith.extui %36 : i1 to i32
    %c0_i32_25 = arith.constant 0 : i32
    %38 = arith.cmpi ne, %37, %c0_i32_25 : i32
    scf.if %38 {
      %c0_26 = arith.constant 0 : index
      %c0_27 = arith.constant 0 : index
      %39 = vector.load %arg8[%c0_26, %c0_27] : memref<256x128xf32, #tpu.memory_space<vmem>>, vector<256x128xf32>
      %40 = tpu.reciprocal %39 {approx = true} : vector<256x128xf32> -> vector<256x128xf32>
      %c0_28 = arith.constant 0 : index
      %c0_29 = arith.constant 0 : index
      %41 = vector.load %arg9[%c0_28, %c0_29] : memref<256x128xf32, #tpu.memory_space<vmem>>, vector<256x128xf32>
      %42 = arith.mulf %41, %40 : vector<256x128xf32>
      %43 = arith.truncf %42 : vector<256x128xf32> to vector<256x128xbf16>
      %c0_30 = arith.constant 0 : index
      %c0_31 = arith.constant 0 : index
      %c0_32 = arith.constant 0 : index
      %44 = vector.load %arg6[%c0_30, %c0_31, %c0_32] : memref<1x256x128xbf16, #tpu.memory_space<vmem>>, vector<1x256x128xbf16>
      %45 = vector.shape_cast %44 : vector<1x256x128xbf16> to vector<256x128xbf16>
      %46 = vector.shape_cast %43 : vector<256x128xbf16> to vector<1x256x128xbf16>
      tpu.vector_store %arg6[%c0_30, %c0_31, %c0_32], %46 {strides = array<i32>} : memref<1x256x128xbf16, #tpu.memory_space<vmem>>, vector<1x256x128xbf16>,
    } else {
    }
    return
  }
  func.func @transform_0(%arg0: i32, %arg1: i32, %arg2: i32) -> (i32, i32, i32) {
    %c0_i32 = arith.constant 0 : i32
    %c0_i32_0 = arith.constant 0 : i32
    return %arg0, %arg1, %c0_i32 : i32, i32, i32
  }
  func.func @transform_1(%arg0: i32, %arg1: i32, %arg2: i32) -> (i32, i32, i32) {
    %c0_i32 = arith.constant 0 : i32
    %c0_i32_0 = arith.constant 0 : i32
    return %arg0, %arg2, %c0_i32 : i32, i32, i32
  }
  func.func @transform_2(%arg0: i32, %arg1: i32, %arg2: i32) -> (i32, i32, i32) {
    %c0_i32 = arith.constant 0 : i32
    %c0_i32_0 = arith.constant 0 : i32
    return %arg0, %arg2, %c0_i32 : i32, i32, i32
  }
  func.func @transform_3(%arg0: i32, %arg1: i32, %arg2: i32) -> (i32, i32, i32) {
    %c0_i32 = arith.constant 0 : i32
    %c0_i32_0 = arith.constant 0 : i32
    return %arg0, %arg1, %c0_i32 : i32, i32, i32
  }
}

</mosaic_0001>

<bundles_post_ra>
// kernel: attend_forward.1
= control target key start
LH: loop header
LB: loop body
LE: loop exit
PB: predicated region body
PF: predicated region fallthrough
CT: control target
= control target key end

     0   :  { %s4635_s0 = inlined_call_operand.hbm [shape: bf16[8,512,128], index: 0, kind: input, shape index: {}]   ;;  %s4636_s1 = inlined_call_operand.hbm [shape: bf16[8,512,128], index: 1, kind: input, shape index: {}]   ;;  %s4637_s2 = inlined_call_operand.hbm [shape: bf16[8,512,128], index: 2, kind: input, shape index: {}]   ;;  %s4638_s3 = inlined_call_operand.hbm [shape: bf16[8,512,128], index: 3, kind: output, shape index: {}]  }
   0x1   :  { %4695 = sst [smem:[#allocation60_spill]] %s4636_s1 }
   0x2   :  { %4696 = sst [smem:[#allocation61_spill]] %s4637_s2 }
   0x3   :  { %4697 = sst [smem:[#allocation62_spill]] %s4638_s3 }
   0x4   :  { %8 = vsyncpa [#allocation6], 0 }
   0x5   :  { %10 = vsyncpa [#allocation6 + $0x1], 0 }
   0x6   :  { %11 = vsyncpa [#allocation9], 0 }
   0x7   :  { %13 = vsyncpa [#allocation9 + $0x1], 0 }
   0x8   :  { %14 = vsyncpa [#allocation7], 0 }
   0x9   :  { %16 = vsyncpa [#allocation7 + $0x1], 0  ;;  %s3369_s12 = smov 0   ;;  %s3371_s13 = smov 0  }
   0xa   :  { %s3373_s14 = smov 0   ;;  %s3375_s15 = smov 0  }
   0xb   :  { %s3377_s16 = smov 0   ;;  %s3379_s17 = smov 0  }
   0xc   :  { %s3381_s18 = smov 0   ;;  %s3383_s19 = smov 0  }
   0xd   :  { %s3385_s20 = smov 0   ;;  %s3387_s21 = smov 0  }
   0xe   :  { %s3389_s22 = smov 0   ;;  %s3391_s23 = smov 0  }
   0xf   :  { %s3393_s24 = smov 0  }
  0x10 LB: > { %4698 = sst [smem:[#allocation15_spill]] %s3297_s13  ;;  %s3433_s25 = sadd.s32 4294967295, %s3341_s24   ;;  %s3341_s24 = sphi %s3393_s24, %s22_s24   ;;  %s3337_s23 = sphi %s3391_s23, %s4860_s23   ;;  %s3333_s22 = sphi %s3389_s22, %s4850_s22   ;;  %s3329_s21 = sphi %s3387_s21, %s4859_s21   ;;  %s3325_s20 = sphi %s3385_s20, %s4858_s20   ;;  %s3321_s19 = sphi %s3383_s19, %s4849_s19   ;;  %s3317_s18 = sphi %s3381_s18, %s4857_s18   ;;  %s3313_s17 = sphi %s3379_s17, %s4856_s17   ;;  %s3309_s16 = sphi %s3377_s16, %s4855_s16   ;;  %s3305_s15 = sphi %s3375_s15, %s4854_s15   ;;  %s3301_s14 = sphi %s3373_s14, %s4853_s14   ;;  %s3297_s13 = sphi %s3371_s13, %s4852_s13   ;;  %s3293_s12 = sphi %s3369_s12, %s4846_s12  }
  0x11   : > { %4699 = sst [smem:[#allocation16_spill]] %s3305_s15  ;;  %s34_s26 = sadd.s32 1, %s3329_s21 }
  0x12   : > { %4700 = sst [smem:[#allocation17_spill]] %s3309_s16  ;;  %p3436_p0 = scmp.ge.s32.totalorder %s34_s26, 2 }
  0x13   : > { %4701 = sst [smem:[#allocation18_spill]] %s3317_s18  ;;  %p58_p1 = scmp.eq.s32.totalorder %s3341_s24, 0 }
  0x14   : > { %4702 = sst [smem:[#allocation19_spill]] %s3321_s19  ;;  %p64_p2 = scmp.eq.s32.totalorder %s3433_s25, 0 }
  0x15   : > { %4703 = sst [smem:[#allocation20_spill]] %s3325_s20  ;;  %s4862_s26 = smov (%p3436_p0, %s34_s26), 0 }
  0x16   : > { %4704 = sst [smem:[#allocation21_spill]] %s3333_s22  ;;  %p85_p3 = scmp.ne.s32.totalorder %s3301_s14, %s3297_s13 }
  0x17   : > { %4705 = sst [smem:[#allocation22_spill]] %s3433_s25  ;;  %p91_p4 = scmp.ne.s32.totalorder %s3297_s13, %s3293_s12 }
  0x18   : > { %p3453_p5 = por %p85_p3, %p58_p1  ;;  %p2741_p7 = scmp.lt.s32.totalorder %s3341_s24, 32 }
  0x19   : > { %p3459_p6 = por %p91_p4, %p64_p2  ;;  %s4644_s5 = sshll.u32 %s3337_s23, 6 }
  0x1a   : > { %s195_s6 = sand.u32 1, %s3341_s24   ;;  %s197_s7 = sand.u32 1, %s3301_s14  }
  0x1b   : > { %s4708_s4 = scalar_select %p3459_p6, 1, 0 }
  0x1c   : > { %s2364_s8 = sshll.u32 %s197_s7, 7  ;;  %s2365_s9 = sshll.u32 %s3329_s21, 5 }
  0x1d   : > { %4709 = sst [smem:[#allocation23_spill]] %s4708_s4  ;;  %s204_s10 = sadd.s32 %s2365_s9, %s4644_s5 }
  0x1e   : > { %s2367_s11 = sshll.u32 %s204_s10, 2  ;;  %s199_s12 = scalar_lea.vmem [#allocation8], %s2364_s8 }
  0x1f   : > { %s209_s29 = sshll.u32 %s199_s12, 4  ;;  %s4710_s1 = sld [smem:[#allocation60_spill]]  ;;  %s210_s29 = int_to_ptr.vmem [resolvable:$true] %s209_s29 }
  0x20   : > { %p3477_p8 = pnand %p2741_p7, %p3453_p5  ;;  %s4712_s2 = sld [smem:[#allocation61_spill]] }
  0x21   : > { %s3484_s28 = scalar_lea.sflag [#allocation9], %s195_s6  ;;  %s4642_s30 = smov 4  }
  0x22   : > { %s223_s6 = scalar_lea.vmem [#allocation10], %s2364_s8  ;;  %p2372_p9 = scmp.ge.s32.totalorder %s3341_s24, 1 }
  0x23   : > { %s3496_s9 = sshll.u32 %s223_s6, 4  ;;  %p241_p10 = scmp.lt.s32.totalorder %s3341_s24, 33  ;;  %s234_s9 = int_to_ptr.vmem [resolvable:$true] %s3496_s9 }
  0x24   : > { %p57_p12 = scmp.ne.s32.totalorder %s3313_s17, %s3309_s16  ;;  %p63_p13 = scmp.ne.s32.totalorder %s3309_s16, %s3305_s15 }
  0x25   : > { %s206_s20 = scalar_lea.hbm %s4710_s1, %s2367_s11  ;;  %p3500_p11 = pnand %p2372_p9, %p241_p10 }
  0x26   : > { %s207_s19 = sshll.u32 %s206_s20, 4  ;;  %s230_s3 = scalar_lea.hbm %s4712_s2, %s2367_s11  ;;  %s208_s19 = int_to_ptr.hbm [resolvable:$true] %s207_s19 }
  0x27   : > { %s4640_s20 = smov 64   ;;  %s231_s11 = sshll.u32 %s230_s3, 4  ;;  %s3494_s11 = int_to_ptr.hbm [resolvable:$true] %s231_s11 }
  0x28   : > { %2733 = dma.hbm_to_vmem [thread:$0]  (!%p3477_p8), %s208_s19, 2048, %s210_s29, %s3484_s28, %s4640_s20, %s4640_s20, %s4642_s30  }
  0x29   : > { %s4713_s10 = scalar_select %p3500_p11, 1, 0 }
  0x2a   : > { %s2357_s19 = sadd.s32 4294967294, %s3341_s24   ;;  %s37_s29 = sadd.s32 1, %s3333_s22 }
  0x2b   : > { %4714 = sst [smem:[#allocation24_spill]] %s4713_s10  ;;  %s50_s3 = sadd.s32 1, %s3313_s17 }
  0x2c   : > { %s4864_s29 = smov (!%p3436_p0, %s37_s29), %s3333_s22  ;;  %p145_p4 = scmp.eq.s32.totalorder %s3433_s25, 31 }
  0x2d   : > { %p39_p3 = scmp.ge.s32.totalorder %s4864_s29, 2  ;;  %p3517_p5 = por %p58_p1, %p57_p12 }
  0x2e   : > { %p3526_p9 = por %p64_p2, %p63_p13  ;;  %s4719_s27 = sadd.s32 1, %s3337_s23 }
  0x2f   : > { %s4866_s29 = smov (%p39_p3, %s4864_s29), 0  ;;  %s4868_s27 = smov (!%p39_p3, %s4719_s27), %s3337_s23 }
  0x30   : > { %s4716_s6 = scalar_select %p3526_p9, 1, 0 }
  0x31   : > { %4718 = sst [smem:[#allocation26_spill]] %s4866_s29  ;;  %s46_s20 = ssub.s32 %s3333_s22, %s4866_s29 }
  0x32   : > { %4717 = sst [smem:[#allocation25_spill]] %s4716_s6  ;;  %p3537_p0 = por %p145_p4, %p57_p12 }
  0x33   : > { %p43_p1 = scmp.ge.s32.totalorder %s4868_s27, 8  ;;  %p151_p10 = scmp.eq.s32.totalorder %s2357_s19, 31 }
  0x34   : > { %s4720_s30 = scalar_select %p3537_p0, 1, 0 }
  0x35   : > { %s171_s5 = sand.u32 1, %s3313_s17   ;;  %s2361_s12 = sshll.u32 %s3333_s22, 5 }
  0x36   : > { %4721 = sst [smem:[#allocation27_spill]] %s4720_s30  ;;  %s4870_s27 = smov (%p43_p1, %s4868_s27), 0 }
  0x37   : > { %4722 = sst [smem:[#allocation28_spill]] %s4870_s27  ;;  %p3548_p2 = por %p151_p10, %p63_p13 }
  0x38   : > { %s45_s2 = ssub.s32 %s3337_s23, %s4870_s27  ;;  %s2360_s29 = sshll.u32 %s171_s5, 7 }
  0x39   : > { %s4723_s1 = scalar_select %p3548_p2, 1, 0 }
  0x3a   : > { %s47_s18 = sor.u32 %s46_s20, %s45_s2  ;;  %s4725_s4 = ssub.s32 %s3329_s21, %s4862_s26 }
  0x3b   : > { %4724 = sst [smem:[#allocation29_spill]] %s4723_s1  ;;  %s75_s30 = sor.u32 %s4725_s4, %s45_s2 }
  0x3c   : > { %p48_p12 = scmp.eq.s32.totalorder %s47_s18, 0  ;;  %p76_p3 = scmp.eq.s32.totalorder %s75_s30, 0 }
  0x3d   : > { %s4726_s19 = sshll.u32 %s3337_s23, 6  ;;  %s4727_s13 = sadd.s32 1, %s3301_s14 }
  0x3e   : > { %s180_s22 = sadd.s32 %s4726_s19, %s2361_s12  ;;  %s175_s6 = scalar_lea.vmem [#allocation5], %s2360_s29 }
  0x3f   : > { %s3560_s15 = scalar_select %p48_p12, %s3313_s17, %s50_s3  }
  0x40   : > { %s3565_s25 = scalar_select %p76_p3, %s3301_s14, %s4727_s13  }
  0x41   : > { %s2363_s1 = sshll.u32 %s180_s22, 2  ;;  %s185_s27 = sshll.u32 %s175_s6, 4  ;;  %s186_s27 = int_to_ptr.vmem [resolvable:$true] %s185_s27 }
  0x42   : > { %s182_s20 = scalar_lea.hbm %s4635_s0, %s2363_s1  ;;  %p2728_p13 = pnand %p2741_p7, %p3517_p5 }
  0x43   : > { %s183_s2 = sshll.u32 %s182_s20, 4  ;;  %s172_s18 = scalar_lea.sflag [#allocation6], %s171_s5  ;;  %s184_s2 = int_to_ptr.hbm [resolvable:$true] %s183_s2 }
  0x44   : > { %s4728_s4 = smov 4   ;;  %s4729_s30 = smov 64  }
  0x45   : > { %2730 = dma.hbm_to_vmem [thread:$0]  (!%p2728_p13), %s184_s2, 2048, %s186_s27, %s172_s18, %s4729_s30, %s4729_s30, %s4728_s4  }
  0x46   : > { %2736 = dma.hbm_to_vmem [thread:$0]  (!%p3477_p8), %s3494_s11, 2048, %s234_s9, %s3484_s28, %s4729_s30, %s4729_s30, %s4728_s4  }
  0x47   : > { %245 = sbr.rel (%p3500_p11) target bundleno = 995 (0x3e3), region = 32 }
  0x4c   : > { %s4731_s1 = sld [smem:[#allocation17_spill]] }
  0x52   : > { %s3588_s22 = sand.u32 1, %s4731_s1  }
  0x53   : > { %s2373_s12 = sshll.u32 %s3588_s22, 7  ;;  %s248_s5 = scalar_lea.sflag [#allocation6], %s3588_s22 }
  0x54   : > { %s3592_s10 = scalar_lea.vmem [#allocation5], %s2373_s12 }
  0x55   : > { %3280 = dma.done.wait (%p3526_p9), %s248_s5, 2048  }
  0x56   : > { %3282 = vsyncadd (%p3526_p9), %s248_s5, 4294965248  ;;  %s4733_s7 = sld [smem:[#allocation22_spill]] }
  0x57   : > { %s4734_s28 = sld [smem:[#allocation15_spill]] }
  0x5c   : > { %s257_s9 = sand.u32 1, %s4733_s7  }
  0x5d   : > { %s259_s29 = sand.u32 1, %s4734_s28   ;;  %s258_s8 = scalar_lea.sflag [#allocation9], %s257_s9 }
  0x5e   : > { %s2374_s3 = sshll.u32 %s259_s29, 7 }
  0x5f   : > { %s3600_s6 = scalar_lea.vmem [#allocation8], %s2374_s3 }
  0x60   : > { %3284 = dma.done.wait (%p3459_p6), %s258_s8, 4096  }
  0x61   : > { %3286 = vsyncadd (%p3459_p6), %s258_s8, 4294963200  ;;  %s3606_s27 = scalar_lea.vmem [#allocation10], %s2374_s3  ;;  %s3608_s19 = scalar_lea.vmem [#allocation11], %s2373_s12 }
  0x62   : > { %s4736_s20 = sld [smem:[#allocation18_spill]] }
  0x68   : > { %p2377_p7 = scmp.ne.s32.totalorder %s4736_s20, 0 }
  0x6a   : > { %312 = sbr.rel (%p2377_p7) target bundleno = 208 (0xd0), region = 48 }
  0x6f   : > { %v3345_v0 = vmov -inf   ;;  %v3346_v1 = vmov 0.0  }
  0x70   : > { %313 = vst [vmem:[#allocation2 + $0xb0] sm:$0xff] %v3345_v0 }
  0x71   : > { %314 = vst [vmem:[#allocation2] sm:$0xff] %v3345_v0 }
  0x72   : > { %315 = vst [vmem:[#allocation2 + $0xd8] sm:$0xff] %v3345_v0 }
  0x73   : > { %316 = vst [vmem:[#allocation2 + $0x18] sm:$0xff] %v3345_v0 }
  0x74   : > { %317 = vst [vmem:[#allocation2 + $0x50] sm:$0xff] %v3345_v0 }
  0x75   : > { %318 = vst [vmem:[#allocation2 + $0x68] sm:$0xff] %v3345_v0 }
  0x76   : > { %319 = vst [vmem:[#allocation2 + $0x30] sm:$0xff] %v3345_v0 }
  0x77   : > { %320 = vst [vmem:[#allocation2 + $0x48] sm:$0xff] %v3345_v0 }
  0x78   : > { %321 = vst [vmem:[#allocation2 + $0x80] sm:$0xff] %v3345_v0 }
  0x79   : > { %322 = vst [vmem:[#allocation2 + $0x88] sm:$0xff] %v3345_v0 }
  0x7a   : > { %323 = vst [vmem:[#allocation2 + $0xe8] sm:$0xff] %v3345_v0 }
  0x7b   : > { %324 = vst [vmem:[#allocation2 + $0xb8] sm:$0xff] %v3345_v0 }
  0x7c   : > { %325 = vst [vmem:[#allocation2 + $0x60] sm:$0xff] %v3345_v0 }
  0x7d   : > { %326 = vst [vmem:[#allocation2 + $0xf0] sm:$0xff] %v3345_v0 }
  0x7e   : > { %327 = vst [vmem:[#allocation2 + $0x8] sm:$0xff] %v3345_v0 }
  0x7f   : > { %328 = vst [vmem:[#allocation2 + $0x78] sm:$0xff] %v3345_v0 }
  0x80   : > { %329 = vst [vmem:[#allocation2 + $0x38] sm:$0xff] %v3345_v0 }
  0x81   : > { %330 = vst [vmem:[#allocation2 + $0x58] sm:$0xff] %v3345_v0 }
  0x82   : > { %331 = vst [vmem:[#allocation2 + $0x40] sm:$0xff] %v3345_v0 }
  0x83   : > { %332 = vst [vmem:[#allocation2 + $0xc8] sm:$0xff] %v3345_v0 }
  0x84   : > { %333 = vst [vmem:[#allocation2 + $0xe0] sm:$0xff] %v3345_v0 }
  0x85   : > { %334 = vst [vmem:[#allocation2 + $0x90] sm:$0xff] %v3345_v0 }
  0x86   : > { %335 = vst [vmem:[#allocation2 + $0x70] sm:$0xff] %v3345_v0 }
  0x87   : > { %336 = vst [vmem:[#allocation2 + $0xc0] sm:$0xff] %v3345_v0 }
  0x88   : > { %337 = vst [vmem:[#allocation2 + $0xa8] sm:$0xff] %v3345_v0 }
  0x89   : > { %338 = vst [vmem:[#allocation2 + $0xd0] sm:$0xff] %v3345_v0 }
  0x8a   : > { %339 = vst [vmem:[#allocation2 + $0x10] sm:$0xff] %v3345_v0 }
  0x8b   : > { %340 = vst [vmem:[#allocation2 + $0x28] sm:$0xff] %v3345_v0 }
  0x8c   : > { %341 = vst [vmem:[#allocation2 + $0xa0] sm:$0xff] %v3345_v0 }
  0x8d   : > { %342 = vst [vmem:[#allocation2 + $0xf8] sm:$0xff] %v3345_v0 }
  0x8e   : > { %343 = vst [vmem:[#allocation2 + $0x20] sm:$0xff] %v3345_v0 }
  0x8f   : > { %344 = vst [vmem:[#allocation2 + $0x98] sm:$0xff] %v3345_v0 }
  0x90   : > { %345 = vst [vmem:[#allocation3 + $0x80] sm:$0xff] %v3346_v1 }
  0x91   : > { %346 = vst [vmem:[#allocation3 + $0xc8] sm:$0xff] %v3346_v1 }
  0x92   : > { %347 = vst [vmem:[#allocation3 + $0xe8] sm:$0xff] %v3346_v1 }
  0x93   : > { %348 = vst [vmem:[#allocation3 + $0x78] sm:$0xff] %v3346_v1 }
  0x94   : > { %349 = vst [vmem:[#allocation3 + $0x8] sm:$0xff] %v3346_v1 }
  0x95   : > { %350 = vst [vmem:[#allocation3 + $0x90] sm:$0xff] %v3346_v1 }
  0x96   : > { %351 = vst [vmem:[#allocation3 + $0x58] sm:$0xff] %v3346_v1 }
  0x97   : > { %352 = vst [vmem:[#allocation3 + $0xa8] sm:$0xff] %v3346_v1 }
  0x98   : > { %353 = vst [vmem:[#allocation3 + $0xd0] sm:$0xff] %v3346_v1 }
  0x99   : > { %354 = vst [vmem:[#allocation3 + $0xb0] sm:$0xff] %v3346_v1 }
  0x9a   : > { %355 = vst [vmem:[#allocation3 + $0x38] sm:$0xff] %v3346_v1 }
  0x9b   : > { %356 = vst [vmem:[#allocation3 + $0x40] sm:$0xff] %v3346_v1 }
  0x9c   : > { %357 = vst [vmem:[#allocation3 + $0xe0] sm:$0xff] %v3346_v1 }
  0x9d   : > { %358 = vst [vmem:[#allocation3 + $0x60] sm:$0xff] %v3346_v1 }
  0x9e   : > { %359 = vst [vmem:[#allocation3 + $0x18] sm:$0xff] %v3346_v1 }
  0x9f   : > { %360 = vst [vmem:[#allocation3 + $0x68] sm:$0xff] %v3346_v1 }
  0xa0   : > { %361 = vst [vmem:[#allocation3 + $0x10] sm:$0xff] %v3346_v1 }
  0xa1   : > { %362 = vst [vmem:[#allocation3 + $0x70] sm:$0xff] %v3346_v1 }
  0xa2   : > { %363 = vst [vmem:[#allocation3 + $0x50] sm:$0xff] %v3346_v1 }
  0xa3   : > { %364 = vst [vmem:[#allocation3 + $0xa0] sm:$0xff] %v3346_v1 }
  0xa4   : > { %365 = vst [vmem:[#allocation3 + $0xd8] sm:$0xff] %v3346_v1 }
  0xa5   : > { %366 = vst [vmem:[#allocation3 + $0x30] sm:$0xff] %v3346_v1 }
  0xa6   : > { %367 = vst [vmem:[#allocation3 + $0x20] sm:$0xff] %v3346_v1 }
  0xa7   : > { %368 = vst [vmem:[#allocation3 + $0xf0] sm:$0xff] %v3346_v1 }
  0xa8   : > { %369 = vst [vmem:[#allocation3 + $0x88] sm:$0xff] %v3346_v1 }
  0xa9   : > { %370 = vst [vmem:[#allocation3 + $0x48] sm:$0xff] %v3346_v1 }
  0xaa   : > { %371 = vst [vmem:[#allocation3 + $0xf8] sm:$0xff] %v3346_v1 }
  0xab   : > { %372 = vst [vmem:[#allocation3 + $0xc0] sm:$0xff] %v3346_v1 }
  0xac   : > { %373 = vst [vmem:[#allocation3 + $0xb8] sm:$0xff] %v3346_v1 }
  0xad   : > { %374 = vst [vmem:[#allocation3] sm:$0xff] %v3346_v1 }
  0xae   : > { %375 = vst [vmem:[#allocation3 + $0x28] sm:$0xff] %v3346_v1 }
  0xaf   : > { %376 = vst [vmem:[#allocation3 + $0x98] sm:$0xff] %v3346_v1 }
  0xb0   : > { %377 = vst [vmem:[#allocation4 + $0xb0] sm:$0xff] %v3346_v1 }
  0xb1   : > { %378 = vst [vmem:[#allocation4 + $0xb8] sm:$0xff] %v3346_v1 }
  0xb2   : > { %379 = vst [vmem:[#allocation4 + $0xc0] sm:$0xff] %v3346_v1 }
  0xb3   : > { %380 = vst [vmem:[#allocation4 + $0x10] sm:$0xff] %v3346_v1 }
  0xb4   : > { %381 = vst [vmem:[#allocation4 + $0x28] sm:$0xff] %v3346_v1 }
  0xb5   : > { %382 = vst [vmem:[#allocation4 + $0x30] sm:$0xff] %v3346_v1 }
  0xb6   : > { %383 = vst [vmem:[#allocation4 + $0xd0] sm:$0xff] %v3346_v1 }
  0xb7   : > { %384 = vst [vmem:[#allocation4 + $0x68] sm:$0xff] %v3346_v1 }
  0xb8   : > { %385 = vst [vmem:[#allocation4 + $0x58] sm:$0xff] %v3346_v1 }
  0xb9   : > { %386 = vst [vmem:[#allocation4] sm:$0xff] %v3346_v1 }
  0xba   : > { %387 = vst [vmem:[#allocation4 + $0x48] sm:$0xff] %v3346_v1 }
  0xbb   : > { %388 = vst [vmem:[#allocation4 + $0x40] sm:$0xff] %v3346_v1 }
  0xbc   : > { %389 = vst [vmem:[#allocation4 + $0x78] sm:$0xff] %v3346_v1 }
  0xbd   : > { %390 = vst [vmem:[#allocation4 + $0xd8] sm:$0xff] %v3346_v1 }
  0xbe   : > { %391 = vst [vmem:[#allocation4 + $0xe0] sm:$0xff] %v3346_v1 }
  0xbf   : > { %392 = vst [vmem:[#allocation4 + $0x80] sm:$0xff] %v3346_v1 }
  0xc0   : > { %393 = vst [vmem:[#allocation4 + $0xa0] sm:$0xff] %v3346_v1 }
  0xc1   : > { %394 = vst [vmem:[#allocation4 + $0x18] sm:$0xff] %v3346_v1 }
  0xc2   : > { %395 = vst [vmem:[#allocation4 + $0xf8] sm:$0xff] %v3346_v1 }
  0xc3   : > { %396 = vst [vmem:[#allocation4 + $0xe8] sm:$0xff] %v3346_v1 }
  0xc4   : > { %397 = vst [vmem:[#allocation4 + $0x90] sm:$0xff] %v3346_v1 }
  0xc5   : > { %398 = vst [vmem:[#allocation4 + $0x20] sm:$0xff] %v3346_v1 }
  0xc6   : > { %399 = vst [vmem:[#allocation4 + $0x38] sm:$0xff] %v3346_v1 }
  0xc7   : > { %400 = vst [vmem:[#allocation4 + $0x70] sm:$0xff] %v3346_v1 }
  0xc8   : > { %401 = vst [vmem:[#allocation4 + $0xa8] sm:$0xff] %v3346_v1 }
  0xc9   : > { %402 = vst [vmem:[#allocation4 + $0xf0] sm:$0xff] %v3346_v1 }
  0xca   : > { %403 = vst [vmem:[#allocation4 + $0x50] sm:$0xff] %v3346_v1 }
  0xcb   : > { %404 = vst [vmem:[#allocation4 + $0x88] sm:$0xff] %v3346_v1 }
  0xcc   : > { %405 = vst [vmem:[#allocation4 + $0xc8] sm:$0xff] %v3346_v1 }
  0xcd   : > { %406 = vst [vmem:[#allocation4 + $0x98] sm:$0xff] %v3346_v1 }
  0xce   : > { %407 = vst [vmem:[#allocation4 + $0x60] sm:$0xff] %v3346_v1 }
  0xcf   : > { %408 = vst [vmem:[#allocation4 + $0x8] sm:$0xff] %v3346_v1 }
  0xd0 PF: > { %v2520_v2 = vld [vmem:[%s3600_s6 + $0x38] sm:$0xff]  ;;  %v2519_v4 = vld [vmem:[%s3600_s6 + $0x30] sm:$0xff]  ;;  %v2518_v6 = vld [vmem:[%s3600_s6 + $0x28] sm:$0xff]  ;;  %s4838_s2 = sld [smem:[#allocation18_spill]] }
  0xd1   : > { %v2528_v3 = vld [vmem:[%s3600_s6 + $0x78] sm:$0xff]  ;;  %649 = vmatpush.bf16.xpose.msra.mxu0 %v2520_v2  ;;  %v2527_v5 = vld [vmem:[%s3600_s6 + $0x70] sm:$0xff]  ;;  %v2526_v7 = vld [vmem:[%s3600_s6 + $0x68] sm:$0xff] }
  0xd2   : > { %738 = vmatpush.bf16.xpose.msra.mxu1 %v2528_v3  ;;  %v2517_v8 = vld [vmem:[%s3600_s6 + $0x20] sm:$0xff]  ;;  %v2516_v10 = vld [vmem:[%s3600_s6 + $0x18] sm:$0xff]  ;;  %v2515_v12 = vld [vmem:[%s3600_s6 + $0x10] sm:$0xff] }
  0xd3   : > { %v2525_v9 = vld [vmem:[%s3600_s6 + $0x60] sm:$0xff]  ;;  %v2524_v11 = vld [vmem:[%s3600_s6 + $0x58] sm:$0xff]  ;;  %v2523_v13 = vld [vmem:[%s3600_s6 + $0x50] sm:$0xff] }
  0xd4   : > { %v2514_v14 = vld [vmem:[%s3600_s6 + $0x8] sm:$0xff]  ;;  %v2546_v16 = vld [vmem:[%s3592_s10] sm:$0xff]   ;;  %v2690_v30 = vld [vmem:[%s3592_s10 + $0x10] sm:$0xff]  }
  0xd5   : > { %v2522_v15 = vld [vmem:[%s3600_s6 + $0x48] sm:$0xff]  ;;  %v2547_v17 = vunpack.c.l.bf16 %v2546_v16  ;;  %v2548_v18 = vunpack.c.h.bf16 %v2546_v16  ;;  %v2513_v19 = vld [vmem:[%s3600_s6] sm:$0xff]  ;;  %v2555_v31 = vunpack.c.l.bf16 %v2690_v30  ;;  %v2556_v32 = vunpack.c.h.bf16 %v2690_v30  ;;  %v2691_v36 = vld [vmem:[%s3592_s10 + $0x18] sm:$0xff]  }
  0xd6   : > { %v2521_v20 = vld [vmem:[%s3600_s6 + $0x40] sm:$0xff]  ;;  %v2689_v24 = vld [vmem:[%s3592_s10 + $0x8] sm:$0xff]   ;;  %v2559_v37 = vunpack.c.l.bf16 %v2691_v36  ;;  %v2560_v38 = vunpack.c.h.bf16 %v2691_v36  ;;  %v2694_v54 = vld [vmem:[%s3592_s10 + $0x30] sm:$0xff]   ;;  %p2506_p6 = scmp.ne.s32.totalorder %s4838_s2, 1 }
  0xd7   : > { %v473_v21 = vmul.f32 0.088378906, %v2547_v17  ;;  %v474_v22 = vmul.f32 0.088378906, %v2548_v18  ;;  %v2551_v25 = vunpack.c.l.bf16 %v2689_v24  ;;  %v2552_v26 = vunpack.c.h.bf16 %v2689_v24  ;;  %v2692_v42 = vld [vmem:[%s3592_s10 + $0x20] sm:$0xff]   ;;  %v2693_v48 = vld [vmem:[%s3592_s10 + $0x28] sm:$0xff]   ;;  %v2695_v60 = vld [vmem:[%s3592_s10 + $0x38] sm:$0xff]  }
  0xd8   : > { %v477_v33 = vmul.f32 0.088378906, %v2555_v31  ;;  %v478_v34 = vmul.f32 0.088378906, %v2556_v32  ;;  %v479_v39 = vmul.f32 0.088378906, %v2559_v37  ;;  %v480_v40 = vmul.f32 0.088378906, %v2560_v38  ;;  %v2696_v2 = vld [vmem:[%s3592_s10 + $0x40] sm:$0xff]  }
  0xd9   : > { %650 = vmatpush.bf16.xpose.msra.mxu0 %v2519_v4  ;;  %v505_v23 = vpack.c.bf16 %v474_v22, %v473_v21  ;;  %v475_v27 = vmul.f32 0.088378906, %v2551_v25  ;;  %v476_v28 = vmul.f32 0.088378906, %v2552_v26  ;;  %v2563_v43 = vunpack.c.l.bf16 %v2692_v42 }
  0xda   : > { %739 = vmatpush.bf16.xpose.msra.mxu1 %v2527_v5  ;;  %v507_v35 = vpack.c.bf16 %v478_v34, %v477_v33  ;;  %v508_v41 = vpack.c.bf16 %v480_v40, %v479_v39  ;;  %v2564_v44 = vunpack.c.h.bf16 %v2692_v42  ;;  %v2567_v49 = vunpack.c.l.bf16 %v2693_v48 }
  0xdb   : > { %v506_v29 = vpack.c.bf16 %v476_v28, %v475_v27  ;;  %v481_v45 = vmul.f32 0.088378906, %v2563_v43  ;;  %v2568_v50 = vunpack.c.h.bf16 %v2693_v48  ;;  %v2571_v55 = vunpack.c.l.bf16 %v2694_v54 }
  0xdc   : > { %v482_v46 = vmul.f32 0.088378906, %v2564_v44  ;;  %v483_v51 = vmul.f32 0.088378906, %v2567_v49  ;;  %v2572_v56 = vunpack.c.h.bf16 %v2694_v54  ;;  %v2575_v61 = vunpack.c.l.bf16 %v2695_v60 }
  0xdd   : > { %v484_v52 = vmul.f32 0.088378906, %v2568_v50  ;;  %v485_v57 = vmul.f32 0.088378906, %v2571_v55  ;;  %v2576_v62 = vunpack.c.h.bf16 %v2695_v60  ;;  %v2579_v3 = vunpack.c.l.bf16 %v2696_v2 }
  0xde   : > { %v509_v47 = vpack.c.bf16 %v482_v46, %v481_v45  ;;  %v486_v58 = vmul.f32 0.088378906, %v2572_v56  ;;  %v487_v63 = vmul.f32 0.088378906, %v2575_v61  ;;  %v2580_v4 = vunpack.c.h.bf16 %v2696_v2 }
  0xdf   : > { %v510_v53 = vpack.c.bf16 %v484_v52, %v483_v51  ;;  %v488_v0 = vmul.f32 0.088378906, %v2576_v62  ;;  %v489_v5 = vmul.f32 0.088378906, %v2579_v3  ;;  %v2536_v3 = vld [vmem:[%s3606_s27 + $0x38] sm:$0xff] }
  0xe0   : > { %v511_v59 = vpack.c.bf16 %v486_v58, %v485_v57  ;;  %1723 = vmatpush.bf16.msra.mxu2 %v2536_v3  ;;  %v3813_v3 = vld [vmem:[#allocation2 + $0xb0] sm:$0xff] }
  0xe1   : > { %651 = vmatpush.bf16.xpose.msra.mxu0 %v2518_v6  ;;  %v512_v1 = vpack.c.bf16 %v488_v0, %v487_v63  ;;  %v490_v6 = vmul.f32 0.088378906, %v2580_v4  ;;  %v2544_v4 = vld [vmem:[%s3606_s27 + $0x78] sm:$0xff] }
  0xe2   : > { %740 = vmatpush.bf16.xpose.msra.mxu1 %v2526_v7  ;;  %1812 = vmatpush.bf16.msra.mxu3 %v2544_v4 }
  0xe3   : > { %v513_v7 = vpack.c.bf16 %v490_v6, %v489_v5 }
  0xe9   : > { %652 = vmatpush.bf16.xpose.msra.mxu0 %v2517_v8 }
  0xea   : > { %741 = vmatpush.bf16.xpose.msra.mxu1 %v2525_v9 }
  0xf1   : > { %653 = vmatpush.bf16.xpose.msra.mxu0 %v2516_v10 }
  0xf2   : > { %742 = vmatpush.bf16.xpose.msra.mxu1 %v2524_v11  ;;  %v2697_v11 = vld [vmem:[%s3592_s10 + $0x48] sm:$0xff]  }
  0xf9   : > { %654 = vmatpush.bf16.xpose.msra.mxu0 %v2515_v12  ;;  %v2583_v12 = vunpack.c.l.bf16 %v2697_v11 }
  0xfa   : > { %743 = vmatpush.bf16.xpose.msra.mxu1 %v2523_v13  ;;  %v2584_v13 = vunpack.c.h.bf16 %v2697_v11  ;;  %v2535_v11 = vld [vmem:[%s3606_s27 + $0x30] sm:$0xff] }
  0xfb   : > { %v491_v17 = vmul.f32 0.088378906, %v2583_v12  ;;  %v2543_v12 = vld [vmem:[%s3606_s27 + $0x70] sm:$0xff]  ;;  %1724 = vmatpush.bf16.msra.mxu2 %v2535_v11 }
  0xfc   : > { %v492_v18 = vmul.f32 0.088378906, %v2584_v13  ;;  %v2702_v13 = vld [vmem:[%s3592_s10 + $0x70] sm:$0xff]   ;;  %1813 = vmatpush.bf16.msra.mxu3 %v2543_v12 }
 0x101   : > { %655 = vmatpush.bf16.xpose.msra.mxu0 %v2514_v14 }
 0x102   : > { %744 = vmatpush.bf16.xpose.msra.mxu1 %v2522_v15 }
 0x109   : > { %656 = vmatpush.bf16.xpose.msra.mxu0 %v2513_v19  ;;  %v514_v19 = vpack.c.bf16 %v492_v18, %v491_v17  ;;  %v2542_v17 = vld [vmem:[%s3606_s27 + $0x68] sm:$0xff]  ;;  %v2603_v18 = vunpack.c.l.bf16 %v2702_v13 }
 0x10a   : > { %745 = vmatpush.bf16.xpose.msra.mxu1 %v2521_v20  ;;  %1814 = vmatpush.bf16.msra.mxu3 %v2542_v17 }
 0x110   : > { %657 = vmatmul.bf16.vlgmr.msra.gmra.mxu0 %v505_v23 }
 0x111   : > { %746 = vmatmul.bf16.vlgmr.msra.gmra.mxu1 %v505_v23  ;;  %v2698_v23 = vld [vmem:[%s3592_s10 + $0x50] sm:$0xff]  }
 0x112   : > { %v2587_v24 = vunpack.c.l.bf16 %v2698_v23  ;;  %v2588_v25 = vunpack.c.h.bf16 %v2698_v23 }
 0x114   : > { %v494_v30 = vmul.f32 0.088378906, %v2588_v25  ;;  %v2533_v25 = vld [vmem:[%s3606_s27 + $0x20] sm:$0xff] }
 0x120   : > { %662 = vmatmul.bf16.gmra.mxu0 %v506_v29 }
 0x121   : > { %751 = vmatmul.bf16.gmra.mxu1 %v506_v29  ;;  %v493_v29 = vmul.f32 0.088378906, %v2587_v24 }
 0x123   : > { %v515_v31 = vpack.c.bf16 %v494_v30, %v493_v29  ;;  %v501_v29 = vmul.f32 0.088378906, %v2603_v18 }
 0x130   : > { %667 = vmatmul.bf16.gmra.mxu0 %v507_v35 }
 0x131   : > { %756 = vmatmul.bf16.gmra.mxu1 %v507_v35  ;;  %v2699_v35 = vld [vmem:[%s3592_s10 + $0x58] sm:$0xff]  }
 0x132   : > { %v2591_v36 = vunpack.c.l.bf16 %v2699_v35  ;;  %v2592_v37 = vunpack.c.h.bf16 %v2699_v35 }
 0x134   : > { %v496_v42 = vmul.f32 0.088378906, %v2592_v37 }
 0x140   : > { %672 = vmatmul.bf16.gmra.mxu0 %v508_v41 }
 0x141   : > { %761 = vmatmul.bf16.gmra.mxu1 %v508_v41  ;;  %v495_v41 = vmul.f32 0.088378906, %v2591_v36 }
 0x143   : > { %v516_v43 = vpack.c.bf16 %v496_v42, %v495_v41  ;;  %v2531_v41 = vld [vmem:[%s3606_s27 + $0x10] sm:$0xff] }
 0x144   : > { %v2539_v42 = vld [vmem:[%s3606_s27 + $0x50] sm:$0xff] }
 0x150   : > { %677 = vmatmul.bf16.gmra.mxu0 %v509_v47 }
 0x151   : > { %766 = vmatmul.bf16.gmra.mxu1 %v509_v47  ;;  %v2700_v47 = vld [vmem:[%s3592_s10 + $0x60] sm:$0xff]  }
 0x152   : > { %v2595_v48 = vunpack.c.l.bf16 %v2700_v47  ;;  %v2596_v49 = vunpack.c.h.bf16 %v2700_v47  ;;  %v2538_v47 = vld [vmem:[%s3606_s27 + $0x48] sm:$0xff] }
 0x154   : > { %v498_v54 = vmul.f32 0.088378906, %v2596_v49 }
 0x160   : > { %682 = vmatmul.bf16.gmra.mxu0 %v510_v53 }
 0x161   : > { %771 = vmatmul.bf16.gmra.mxu1 %v510_v53  ;;  %v497_v53 = vmul.f32 0.088378906, %v2595_v48 }
 0x163   : > { %v517_v55 = vpack.c.bf16 %v498_v54, %v497_v53 }
 0x170   : > { %687 = vmatmul.bf16.gmra.mxu0 %v511_v59 }
 0x171   : > { %776 = vmatmul.bf16.gmra.mxu1 %v511_v59  ;;  %v2701_v59 = vld [vmem:[%s3592_s10 + $0x68] sm:$0xff]  }
 0x172   : > { %v2599_v60 = vunpack.c.l.bf16 %v2701_v59  ;;  %v2600_v61 = vunpack.c.h.bf16 %v2701_v59 }
 0x174   : > { %v500_v2 = vmul.f32 0.088378906, %v2600_v61 }
 0x180   : > { %692 = vmatmul.bf16.gmra.mxu0 %v512_v1 }
 0x181   : > { %781 = vmatmul.bf16.gmra.mxu1 %v512_v1  ;;  %v499_v1 = vmul.f32 0.088378906, %v2599_v60 }
 0x183   : > { %v518_v5 = vpack.c.bf16 %v500_v2, %v499_v1 }
 0x18d   : > { %v3700_v8 = vpop.f32.mrf.mxu0 }
 0x18e   : > { %v3702_v9 = vpop.f32.mrf.mxu1 }
 0x18f   : > { %v859_v10 = vmax.f32 %v3700_v8, %v3702_v9 }
 0x190   : > { %697 = vmatmul.bf16.gmra.mxu0 %v513_v7 }
 0x191   : > { %786 = vmatmul.bf16.gmra.mxu1 %v513_v7  ;;  %860 = vmax.xlane.f32.xlu0 %v859_v10 }
 0x195   : > { %v3707_v14 = vpop.f32.mrf.mxu0 }
 0x196   : > { %v3709_v15 = vpop.f32.mrf.mxu1 }
 0x197   : > { %v862_v16 = vmax.f32 %v3707_v14, %v3709_v15 }
 0x199   : > { %863 = vmax.xlane.f32.xlu0 %v862_v16  ;;  %v2534_v16 = vld [vmem:[%s3606_s27 + $0x28] sm:$0xff] }
 0x19a   : > { %1725 = vmatpush.bf16.msra.mxu2 %v2534_v16 }
 0x19d   : > { %v3713_v20 = vpop.f32.mrf.mxu0 }
 0x19e   : > { %v3715_v21 = vpop.f32.mrf.mxu1  ;;  %1726 = vmatpush.bf16.msra.mxu2 %v2533_v25 }
 0x19f   : > { %v865_v22 = vmax.f32 %v3713_v20, %v3715_v21 }
 0x1a0   : > { %702 = vmatmul.bf16.gmra.mxu0 %v514_v19 }
 0x1a1   : > { %791 = vmatmul.bf16.gmra.mxu1 %v514_v19  ;;  %866 = vmax.xlane.f32.xlu1 %v865_v22  ;;  %v2604_v19 = vunpack.c.h.bf16 %v2702_v13 }
 0x1a3   : > { %v502_v30 = vmul.f32 0.088378906, %v2604_v19 }
 0x1a5   : > { %v3720_v26 = vpop.f32.mrf.mxu0  ;;  %v519_v35 = vpack.c.bf16 %v502_v30, %v501_v29 }
 0x1a6   : > { %v3722_v27 = vpop.f32.mrf.mxu1 }
 0x1a7   : > { %v868_v28 = vmax.f32 %v3720_v26, %v3722_v27 }
 0x1a9   : > { %869 = vmax.xlane.f32.xlu1 %v868_v28  ;;  %v2541_v28 = vld [vmem:[%s3606_s27 + $0x60] sm:$0xff] }
 0x1aa   : > { %1815 = vmatpush.bf16.msra.mxu3 %v2541_v28 }
 0x1ad   : > { %v3726_v32 = vpop.f32.mrf.mxu0 }
 0x1ae   : > { %v3728_v33 = vpop.f32.mrf.mxu1 }
 0x1af   : > { %v871_v34 = vmax.f32 %v3726_v32, %v3728_v33 }
 0x1b0   : > { %707 = vmatmul.bf16.gmra.mxu0 %v515_v31 }
 0x1b1   : > { %796 = vmatmul.bf16.gmra.mxu1 %v515_v31  ;;  %872 = vmax.xlane.f32.xlu2 %v871_v34  ;;  %v2532_v31 = vld [vmem:[%s3606_s27 + $0x18] sm:$0xff] }
 0x1b2   : > { %v2540_v34 = vld [vmem:[%s3606_s27 + $0x58] sm:$0xff]  ;;  %1727 = vmatpush.bf16.msra.mxu2 %v2532_v31 }
 0x1b3   : > { %1816 = vmatpush.bf16.msra.mxu3 %v2540_v34 }
 0x1b5   : > { %v3733_v38 = vpop.f32.mrf.mxu0 }
 0x1b6   : > { %v3735_v39 = vpop.f32.mrf.mxu1  ;;  %1728 = vmatpush.bf16.msra.mxu2 %v2531_v41 }
 0x1b7   : > { %v874_v40 = vmax.f32 %v3733_v38, %v3735_v39  ;;  %1817 = vmatpush.bf16.msra.mxu3 %v2539_v42  ;;  %v3849_v42 = vld [vmem:[#allocation2 + $0xd8] sm:$0xff] }
 0x1b9   : > { %875 = vmax.xlane.f32.xlu2 %v874_v40 }
 0x1bb   : > { %1818 = vmatpush.bf16.msra.mxu3 %v2538_v47 }
 0x1bd   : > { %v3739_v44 = vpop.f32.mrf.mxu0 }
 0x1be   : > { %v3741_v45 = vpop.f32.mrf.mxu1 }
 0x1bf   : > { %v877_v46 = vmax.f32 %v3739_v44, %v3741_v45 }
 0x1c0   : > { %712 = vmatmul.bf16.gmra.mxu0 %v516_v43 }
 0x1c1   : > { %801 = vmatmul.bf16.gmra.mxu1 %v516_v43  ;;  %878 = vmax.xlane.f32.xlu0 %v877_v46  ;;  %v2703_v43 = vld [vmem:[%s3592_s10 + $0x78] sm:$0xff]   ;;  %v2530_v46 = vld [vmem:[%s3606_s27 + $0x8] sm:$0xff] }
 0x1c2   : > { %v2607_v48 = vunpack.c.l.bf16 %v2703_v43  ;;  %v2608_v49 = vunpack.c.h.bf16 %v2703_v43  ;;  %1729 = vmatpush.bf16.msra.mxu2 %v2530_v46 }
 0x1c4   : > { %v503_v59 = vmul.f32 0.088378906, %v2607_v48  ;;  %v504_v60 = vmul.f32 0.088378906, %v2608_v49 }
 0x1c5   : > { %v3746_v50 = vpop.f32.mrf.mxu0 }
 0x1c6   : > { %v3748_v51 = vpop.f32.mrf.mxu1  ;;  %v520_v61 = vpack.c.bf16 %v504_v60, %v503_v59 }
 0x1c7   : > { %v880_v52 = vmax.f32 %v3746_v50, %v3748_v51 }
 0x1c9   : > { %881 = vmax.xlane.f32.xlu1 %v880_v52 }
 0x1cd   : > { %v3752_v56 = vpop.f32.mrf.mxu0 }
 0x1ce   : > { %v3754_v57 = vpop.f32.mrf.mxu1 }
 0x1cf   : > { %v883_v58 = vmax.f32 %v3752_v56, %v3754_v57 }
 0x1d0   : > { %717 = vmatmul.bf16.gmra.mxu0 %v517_v55 }
 0x1d1   : > { %806 = vmatmul.bf16.gmra.mxu1 %v517_v55  ;;  %884 = vmax.xlane.f32.xlu2 %v883_v58  ;;  %v2529_v55 = vld [vmem:[%s3606_s27] sm:$0xff] }
 0x1d2   : > { %v2537_v58 = vld [vmem:[%s3606_s27 + $0x40] sm:$0xff]  ;;  %1730 = vmatpush.bf16.msra.mxu2 %v2529_v55 }
 0x1d3   : > { %1819 = vmatpush.bf16.msra.mxu3 %v2537_v58 }
 0x1d5   : > { %v3759_v62 = vpop.f32.mrf.mxu0 }
 0x1d6   : > { %v3761_v63 = vpop.f32.mrf.mxu1 }
 0x1d7   : > { %v886_v0 = vmax.f32 %v3759_v62, %v3761_v63 }
 0x1d9   : > { %887 = vmax.xlane.f32.xlu0 %v886_v0 }
 0x1dd   : > { %v3767_v6 = vpop.f32.mrf.mxu0 }
 0x1de   : > { %v3769_v7 = vpop.f32.mrf.mxu1 }
 0x1df   : > { %v889_v10 = vmax.f32 %v3767_v6, %v3769_v7 }
 0x1e0   : > { %722 = vmatmul.bf16.gmra.mxu0 %v518_v5 }
 0x1e1   : > { %811 = vmatmul.bf16.gmra.mxu1 %v518_v5  ;;  %890 = vmax.xlane.f32.xlu1 %v889_v10 }
 0x1e5   : > { %v3778_v22 = vpop.f32.mrf.mxu0 }
 0x1e6   : > { %v3780_v23 = vpop.f32.mrf.mxu1 }
 0x1e7   : > { %v892_v24 = vmax.f32 %v3778_v22, %v3780_v23 }
 0x1e9   : > { %893 = vmax.xlane.f32.xlu2 %v892_v24  ;;  %v3831_v24 = vld [vmem:[#allocation2] sm:$0xff] }
 0x1ed   : > { %v3788_v36 = vpop.f32.mrf.mxu0 }
 0x1ee   : > { %v3790_v37 = vpop.f32.mrf.mxu1 }
 0x1ef   : > { %v895_v40 = vmax.f32 %v3788_v36, %v3790_v37 }
 0x1f0   : > { %727 = vmatmul.bf16.gmra.mxu0 %v519_v35 }
 0x1f1   : > { %816 = vmatmul.bf16.gmra.mxu1 %v519_v35  ;;  %896 = vmax.xlane.f32.xlu0 %v895_v40 }
 0x1f5   : > { %v3799_v52 = vpop.f32.mrf.mxu0 }
 0x1f6   : > { %v3801_v53 = vpop.f32.mrf.mxu1 }
 0x1f7   : > { %v898_v54 = vmax.f32 %v3799_v52, %v3801_v53 }
 0x1f9   : > { %899 = vmax.xlane.f32.xlu1 %v898_v54 }
 0x1fd   : > { %v3807_v0 = vpop.f32.mrf.mxu0 }
 0x1fe   : > { %v3809_v1 = vpop.f32.mrf.mxu1 }
 0x1ff   : > { %v901_v2 = vmax.f32 %v3807_v0, %v3809_v1 }
 0x200   : > { %732 = vmatmul.bf16.gmra.mxu0 %v520_v61 }
 0x201   : > { %821 = vmatmul.bf16.gmra.mxu1 %v520_v61  ;;  %902 = vmax.xlane.f32.xlu2 %v901_v2  ;;  %v3869_v2 = vld [vmem:[#allocation2 + $0x18] sm:$0xff] }
 0x204   : > { %v861_v4 = vpop.xlane.xlu0 %860 }
 0x205   : > { %v3816_v5 = vmax.f32 %v3813_v3, %v861_v4  ;;  %v3818_v10 = vpop.f32.mrf.mxu0 }
 0x206   : > { %v3820_v11 = vpop.f32.mrf.mxu1 }
 0x207   : > { %v904_v12 = vmax.f32 %v3818_v10, %v3820_v11  ;;  %v1083_v16 = vsub.f32 %v3700_v8, %v3816_v5  ;;  %v1084_v17 = vsub.f32 %v3702_v9, %v3816_v5  ;;  %1965 = vst [vmem:[#allocation2 + $0xb0] sm:$0xff] %v3816_v5 }
 0x209   : > { %905 = vmax.xlane.f32.xlu0 %v904_v12  ;;  %v1147_v18 = vmul.f32 1.442695, %v1083_v16  ;;  %v1149_v19 = vmul.f32 1.442695, %v1084_v17 }
 0x20b   : > { %2853 = vpow2.f32 %v1147_v18 }
 0x20c   : > { %v864_v25 = vpop.xlane.xlu0 %863  ;;  %2855 = vpow2.f32 %v1149_v19 }
 0x20d   : > { %v3834_v28 = vmax.f32 %v3831_v24, %v864_v25  ;;  %v3836_v29 = vpop.f32.mrf.mxu0 }
 0x20e   : > { %v3838_v30 = vpop.f32.mrf.mxu1 }
 0x20f   : > { %v907_v8 = vmax.f32 %v3836_v29, %v3838_v30  ;;  %v1085_v31 = vsub.f32 %v3707_v14, %v3834_v28  ;;  %v1086_v34 = vsub.f32 %v3709_v15, %v3834_v28  ;;  %1966 = vst [vmem:[#allocation2] sm:$0xff] %v3834_v28 }
 0x211   : > { %908 = vmax.xlane.f32.xlu1 %v907_v8  ;;  %v1151_v35 = vmul.f32 1.442695, %v1085_v31  ;;  %v1153_v40 = vmul.f32 1.442695, %v1086_v34  ;;  %v2854_v41 = vpop.eup %2853 }
 0x212   : > { %v2856_v43 = vpop.eup %2855 }
 0x213   : > { %2857 = vpow2.f32 %v1151_v35  ;;  %v3851_v47 = vadd.f32 %v2856_v43, %v2854_v41 }
 0x214   : > { %v867_v46 = vpop.xlane.xlu1 %866  ;;  %2859 = vpow2.f32 %v1153_v40 }
 0x215   : > { %v3854_v48 = vmax.f32 %v3849_v42, %v867_v46  ;;  %v3856_v14 = vpop.f32.mrf.mxu0 }
 0x216   : > { %v3858_v49 = vpop.f32.mrf.mxu1 }
 0x217   : > { %v910_v15 = vmax.f32 %v3856_v14, %v3858_v49  ;;  %v1087_v55 = vsub.f32 %v3713_v20, %v3854_v48  ;;  %v1088_v58 = vsub.f32 %v3715_v21, %v3854_v48  ;;  %1967 = vst [vmem:[#allocation2 + $0xd8] sm:$0xff] %v3854_v48 }
 0x219   : > { %911 = vmax.xlane.f32.xlu2 %v910_v15  ;;  %v1155_v59 = vmul.f32 1.442695, %v1087_v55  ;;  %v1157_v60 = vmul.f32 1.442695, %v1088_v58  ;;  %v2858_v61 = vpop.eup %2857 }
 0x21a   : > { %v2860_v4 = vpop.eup %2859  ;;  %v1563_v12 = vpack.c.bf16 %v2858_v61, %v2854_v41 }
 0x21b   : > { %v1564_v16 = vpack.c.bf16 %v2860_v4, %v2856_v43  ;;  %2861 = vpow2.f32 %v1155_v59  ;;  %v3871_v18 = vadd.f32 %v2860_v4, %v2858_v61  ;;  %v3889_v43 = vld [vmem:[#allocation2 + $0x50] sm:$0xff] }
 0x21c   : > { %v870_v17 = vpop.xlane.xlu1 %869  ;;  %1731 = vmatmul.bf16.vlgmr.msra.gmra.mxu2 %v1563_v12  ;;  %2863 = vpow2.f32 %v1157_v60 }
 0x21d   : > { %v3874_v20 = vmax.f32 %v3869_v2, %v870_v17  ;;  %v3876_v21 = vpop.f32.mrf.mxu0  ;;  %1820 = vmatmul.bf16.vlgmr.msra.gmra.mxu3 %v1564_v16 }
 0x21e   : > { %v3878_v19 = vpop.f32.mrf.mxu1 }
 0x21f   : > { %v913_v25 = vmax.f32 %v3876_v21, %v3878_v19  ;;  %v1089_v31 = vsub.f32 %v3720_v26, %v3874_v20  ;;  %v1090_v34 = vsub.f32 %v3722_v27, %v3874_v20  ;;  %1968 = vst [vmem:[#allocation2 + $0x18] sm:$0xff] %v3874_v20 }
 0x221   : > { %914 = vmax.xlane.f32.xlu0 %v913_v25  ;;  %v1159_v35 = vmul.f32 1.442695, %v1089_v31  ;;  %v1161_v40 = vmul.f32 1.442695, %v1090_v34  ;;  %v2862_v41 = vpop.eup %2861  ;;  %v3909_v25 = vld [vmem:[#allocation2 + $0x68] sm:$0xff] }
 0x222   : > { %v2864_v46 = vpop.eup %2863  ;;  %4737 = vst [vmem:[#allocation30_spill] sm:$0xff] %v3909_v25 }
 0x223   : > { %2865 = vpow2.f32 %v1159_v35  ;;  %v3891_v55 = vadd.f32 %v2864_v46, %v2862_v41 }
 0x224   : > { %v873_v15 = vpop.xlane.xlu2 %872  ;;  %2867 = vpow2.f32 %v1161_v40 }
 0x225   : > { %v3894_v58 = vmax.f32 %v3889_v43, %v873_v15  ;;  %v3896_v26 = vpop.f32.mrf.mxu0 }
 0x226   : > { %v3898_v59 = vpop.f32.mrf.mxu1 }
 0x227   : > { %v916_v27 = vmax.f32 %v3896_v26, %v3898_v59  ;;  %v1091_v61 = vsub.f32 %v3726_v32, %v3894_v58  ;;  %v1092_v4 = vsub.f32 %v3728_v33, %v3894_v58  ;;  %1969 = vst [vmem:[#allocation2 + $0x50] sm:$0xff] %v3894_v58 }
 0x229   : > { %917 = vmax.xlane.f32.xlu1 %v916_v27  ;;  %v1163_v12 = vmul.f32 1.442695, %v1091_v61  ;;  %v1165_v16 = vmul.f32 1.442695, %v1092_v4  ;;  %v2866_v17 = vpop.eup %2865 }
 0x22a   : > { %v2868_v31 = vpop.eup %2867  ;;  %v1565_v34 = vpack.c.bf16 %v2866_v17, %v2862_v41 }
 0x22b   : > { %v1566_v35 = vpack.c.bf16 %v2868_v31, %v2864_v46  ;;  %2869 = vpow2.f32 %v1163_v12  ;;  %v3911_v15 = vadd.f32 %v2868_v31, %v2866_v17 }
 0x22c   : > { %v876_v40 = vpop.xlane.xlu2 %875  ;;  %1736 = vmatmul.bf16.gmra.mxu2 %v1565_v34  ;;  %2871 = vpow2.f32 %v1165_v16  ;;  %v3929_v16 = vld [vmem:[#allocation2 + $0x30] sm:$0xff] }
 0x22d   : > { %v3914_v32 = vmax.f32 %v3909_v25, %v876_v40  ;;  %v3916_v33 = vpop.f32.mrf.mxu0  ;;  %1825 = vmatmul.bf16.gmra.mxu3 %v1566_v35  ;;  %4739 = vst [vmem:[#allocation32_spill] sm:$0xff] %v3929_v16 }
 0x22e   : > { %v3918_v60 = vpop.f32.mrf.mxu1 }
 0x22f   : > { %4738 = vst [vmem:[#allocation31_spill] sm:$0xff] %v3914_v32  ;;  %v919_v27 = vmax.f32 %v3916_v33, %v3918_v60  ;;  %v1093_v46 = vsub.f32 %v3733_v38, %v3914_v32  ;;  %v1094_v61 = vsub.f32 %v3735_v39, %v3914_v32 }
 0x230   : > { %1970 = vst [vmem:[#allocation2 + $0x68] sm:$0xff] %v3914_v32 }
 0x231   : > { %920 = vmax.xlane.f32.xlu2 %v919_v27  ;;  %v1167_v4 = vmul.f32 1.442695, %v1093_v46  ;;  %v1169_v12 = vmul.f32 1.442695, %v1094_v61  ;;  %v2870_v17 = vpop.eup %2869 }
 0x232   : > { %v2872_v31 = vpop.eup %2871 }
 0x233   : > { %2873 = vpow2.f32 %v1167_v4  ;;  %v3931_v35 = vadd.f32 %v2872_v31, %v2870_v17  ;;  %v3949_v4 = vld [vmem:[#allocation2 + $0x48] sm:$0xff] }
 0x234   : > { %v879_v34 = vpop.xlane.xlu0 %878  ;;  %2875 = vpow2.f32 %v1169_v12  ;;  %4741 = vst [vmem:[#allocation34_spill] sm:$0xff] %v3949_v4 }
 0x235   : > { %v3934_v40 = vmax.f32 %v3929_v16, %v879_v34  ;;  %v3936_v38 = vpop.f32.mrf.mxu0 }
 0x236   : > { %v3938_v41 = vpop.f32.mrf.mxu1 }
 0x237   : > { %4740 = vst [vmem:[#allocation33_spill] sm:$0xff] %v3934_v40  ;;  %v922_v39 = vmax.f32 %v3936_v38, %v3938_v41  ;;  %v1095_v46 = vsub.f32 %v3739_v44, %v3934_v40  ;;  %v1096_v61 = vsub.f32 %v3741_v45, %v3934_v40 }
 0x238   : > { %1971 = vst [vmem:[#allocation2 + $0x30] sm:$0xff] %v3934_v40 }
 0x239   : > { %923 = vmax.xlane.f32.xlu0 %v922_v39  ;;  %v1171_v34 = vmul.f32 1.442695, %v1095_v46  ;;  %v1173_v8 = vmul.f32 1.442695, %v1096_v61  ;;  %v2874_v12 = vpop.eup %2873 }
 0x23a   : > { %v2876_v54 = vpop.eup %2875  ;;  %v1567_v9 = vpack.c.bf16 %v2874_v12, %v2870_v17 }
 0x23b   : > { %v1568_v32 = vpack.c.bf16 %v2876_v54, %v2872_v31  ;;  %2877 = vpow2.f32 %v1171_v34  ;;  %v3954_v44 = vadd.f32 %v2876_v54, %v2874_v12 }
 0x23c   : > { %v882_v13 = vpop.xlane.xlu1 %881  ;;  %1741 = vmatmul.bf16.gmra.mxu2 %v1567_v9  ;;  %2879 = vpow2.f32 %v1173_v8  ;;  %v3969_v8 = vld [vmem:[#allocation2 + $0x80] sm:$0xff] }
 0x23d   : > { %v3952_v27 = vmax.f32 %v3949_v4, %v882_v13  ;;  %v3956_v45 = vpop.f32.mrf.mxu0  ;;  %1830 = vmatmul.bf16.gmra.mxu3 %v1568_v32  ;;  %4743 = vst [vmem:[#allocation36_spill] sm:$0xff] %v3969_v8 }
 0x23e   : > { %v3958_v40 = vpop.f32.mrf.mxu1 }
 0x23f   : > { %4742 = vst [vmem:[#allocation35_spill] sm:$0xff] %v3952_v27  ;;  %v1097_v17 = vsub.f32 %v3746_v50, %v3952_v27  ;;  %v1098_v13 = vsub.f32 %v3748_v51, %v3952_v27  ;;  %v925_v9 = vmax.f32 %v3956_v45, %v3958_v40 }
 0x240   : > { %1972 = vst [vmem:[#allocation2 + $0x48] sm:$0xff] %v3952_v27 }
 0x241   : > { %v1175_v54 = vmul.f32 1.442695, %v1097_v17  ;;  %v1177_v31 = vmul.f32 1.442695, %v1098_v13  ;;  %926 = vmax.xlane.f32.xlu1 %v925_v9  ;;  %v2878_v46 = vpop.eup %2877 }
 0x242   : > { %v2880_v32 = vpop.eup %2879 }
 0x243   : > { %2881 = vpow2.f32 %v1175_v54  ;;  %v3971_v34 = vadd.f32 %v2880_v32, %v2878_v46 }
 0x244   : > { %v885_v61 = vpop.xlane.xlu2 %884  ;;  %2883 = vpow2.f32 %v1177_v31 }
 0x245   : > { %v3974_v50 = vmax.f32 %v3969_v8, %v885_v61  ;;  %v3976_v51 = vpop.f32.mrf.mxu0  ;;  %v3989_v61 = vld [vmem:[#allocation2 + $0x88] sm:$0xff] }
 0x246   : > { %4745 = vst [vmem:[#allocation38_spill] sm:$0xff] %v3976_v51  ;;  %v3978_v12 = vpop.f32.mrf.mxu1 }
 0x247   : > { %4744 = vst [vmem:[#allocation37_spill] sm:$0xff] %v3974_v50  ;;  %v928_v17 = vmax.f32 %v3976_v51, %v3978_v12  ;;  %v1099_v9 = vsub.f32 %v3752_v56, %v3974_v50  ;;  %v1100_v54 = vsub.f32 %v3754_v57, %v3974_v50 }
 0x248   : > { %4746 = vst [vmem:[#allocation39_spill] sm:$0xff] %v3978_v12 }
 0x249   : > { %1973 = vst [vmem:[#allocation2 + $0x80] sm:$0xff] %v3974_v50  ;;  %929 = vmax.xlane.f32.xlu2 %v928_v17  ;;  %v2882_v31 = vpop.eup %2881  ;;  %v1179_v39 = vmul.f32 1.442695, %v1099_v9  ;;  %v1181_v27 = vmul.f32 1.442695, %v1100_v54 }
 0x24a   : > { %4747 = vst [vmem:[#allocation40_spill] sm:$0xff] %v3989_v61  ;;  %v2884_v4 = vpop.eup %2883  ;;  %v1569_v16 = vpack.c.bf16 %v2882_v31, %v2878_v46 }
 0x24b   : > { %v1570_v12 = vpack.c.bf16 %v2884_v4, %v2880_v32  ;;  %v3991_v25 = vadd.f32 %v2884_v4, %v2882_v31  ;;  %2885 = vpow2.f32 %v1179_v39 }
 0x24c   : > { %v888_v51 = vpop.xlane.xlu0 %887  ;;  %1746 = vmatmul.bf16.gmra.mxu2 %v1569_v16  ;;  %2887 = vpow2.f32 %v1181_v27  ;;  %v4009_v27 = vld [vmem:[#allocation2 + $0xe8] sm:$0xff] }
 0x24d   : > { %v3994_v13 = vmax.f32 %v3989_v61, %v888_v51  ;;  %v3996_v56 = vpop.f32.mrf.mxu0  ;;  %1835 = vmatmul.bf16.gmra.mxu3 %v1570_v12  ;;  %4749 = vst [vmem:[#allocation42_spill] sm:$0xff] %v4009_v27 }
 0x24e   : > { %v3998_v57 = vpop.f32.mrf.mxu1 }
 0x24f   : > { %4748 = vst [vmem:[#allocation41_spill] sm:$0xff] %v3994_v13  ;;  %v1101_v46 = vsub.f32 %v3759_v62, %v3994_v13  ;;  %v1102_v4 = vsub.f32 %v3761_v63, %v3994_v13  ;;  %v931_v16 = vmax.f32 %v3996_v56, %v3998_v57 }
 0x250   : > { %1974 = vst [vmem:[#allocation2 + $0x88] sm:$0xff] %v3994_v13 }
 0x251   : > { %v1183_v39 = vmul.f32 1.442695, %v1101_v46  ;;  %v1185_v32 = vmul.f32 1.442695, %v1102_v4  ;;  %932 = vmax.xlane.f32.xlu0 %v931_v16  ;;  %v2886_v51 = vpop.eup %2885 }
 0x252   : > { %v2888_v12 = vpop.eup %2887 }
 0x253   : > { %2889 = vpow2.f32 %v1183_v39  ;;  %v4011_v54 = vadd.f32 %v2888_v12, %v2886_v51 }
 0x254   : > { %v891_v9 = vpop.xlane.xlu1 %890  ;;  %2891 = vpow2.f32 %v1185_v32  ;;  %v4027_v32 = vld [vmem:[#allocation2 + $0xb8] sm:$0xff] }
 0x255   : > { %v4014_v62 = vmax.f32 %v4009_v27, %v891_v9  ;;  %v4016_v63 = vpop.f32.mrf.mxu0  ;;  %4752 = vst [vmem:[#allocation45_spill] sm:$0xff] %v4027_v32 }
 0x256   : > { %v4018_v31 = vpop.f32.mrf.mxu1 }
 0x257   : > { %4750 = vst [vmem:[#allocation43_spill] sm:$0xff] %v4014_v62  ;;  %v934_v46 = vmax.f32 %v4016_v63, %v4018_v31  ;;  %v1103_v39 = vsub.f32 %v3767_v6, %v4014_v62  ;;  %v1104_v17 = vsub.f32 %v3769_v7, %v4014_v62 }
 0x258   : > { %4751 = vst [vmem:[#allocation44_spill] sm:$0xff] %v4018_v31 }
 0x259   : > { %1975 = vst [vmem:[#allocation2 + $0xe8] sm:$0xff] %v4014_v62  ;;  %935 = vmax.xlane.f32.xlu1 %v934_v46  ;;  %v2890_v16 = vpop.eup %2889  ;;  %v1187_v6 = vmul.f32 1.442695, %v1103_v39 }
 0x25a   : > { %v2892_v9 = vpop.eup %2891  ;;  %v1571_v13 = vpack.c.bf16 %v2890_v16, %v2886_v51 }
 0x25b   : > { %v1572_v61 = vpack.c.bf16 %v2892_v9, %v2888_v12  ;;  %v4031_v8 = vadd.f32 %v2892_v9, %v2890_v16  ;;  %2893 = vpow2.f32 %v1187_v6 }
 0x25c   : > { %v894_v50 = vpop.xlane.xlu2 %893  ;;  %1751 = vmatmul.bf16.gmra.mxu2 %v1571_v13 }
 0x25d   : > { %v4034_v4 = vmax.f32 %v4027_v32, %v894_v50  ;;  %v4036_v46 = vpop.f32.mrf.mxu0  ;;  %1840 = vmatmul.bf16.gmra.mxu3 %v1572_v61  ;;  %v1189_v50 = vmul.f32 1.442695, %v1104_v17  ;;  %v4049_v61 = vld [vmem:[#allocation2 + $0x60] sm:$0xff] }
 0x25e   : > { %v4038_v27 = vpop.f32.mrf.mxu1  ;;  %4754 = vst [vmem:[#allocation47_spill] sm:$0xff] %v4049_v61 }
 0x25f   : > { %4753 = vst [vmem:[#allocation46_spill] sm:$0xff] %v4034_v4  ;;  %v1105_v7 = vsub.f32 %v3778_v22, %v4034_v4  ;;  %v1106_v51 = vsub.f32 %v3780_v23, %v4034_v4  ;;  %v937_v13 = vmax.f32 %v4036_v46, %v4038_v27  ;;  %2895 = vpow2.f32 %v1189_v50 }
 0x260   : > { %1976 = vst [vmem:[#allocation2 + $0xb8] sm:$0xff] %v4034_v4 }
 0x261   : > { %v1191_v12 = vmul.f32 1.442695, %v1105_v7  ;;  %v1193_v16 = vmul.f32 1.442695, %v1106_v51  ;;  %938 = vmax.xlane.f32.xlu2 %v937_v13  ;;  %v4060_v7 = vpop.eup %2893 }
 0x263   : > { %2897 = vpow2.f32 %v1191_v12  ;;  %v4069_v12 = vld [vmem:[#allocation2 + $0xf0] sm:$0xff] }
 0x264   : > { %v897_v39 = vpop.xlane.xlu0 %896  ;;  %2899 = vpow2.f32 %v1193_v16  ;;  %4757 = vst [vmem:[#allocation50_spill] sm:$0xff] %v4069_v12 }
 0x265   : > { %v4052_v22 = vmax.f32 %v4049_v61, %v897_v39  ;;  %v4054_v23 = vpop.f32.mrf.mxu0  ;;  %v4065_v51 = vpop.eup %2895 }
 0x266   : > { %v4056_v9 = vpop.f32.mrf.mxu1 }
 0x267   : > { %4755 = vst [vmem:[#allocation48_spill] sm:$0xff] %v4052_v22  ;;  %v940_v17 = vmax.f32 %v4054_v23, %v4056_v9  ;;  %v1107_v13 = vsub.f32 %v3788_v36, %v4052_v22  ;;  %v1108_v39 = vsub.f32 %v3790_v37, %v4052_v22 }
 0x268   : > { %4756 = vst [vmem:[#allocation49_spill] sm:$0xff] %v4056_v9 }
 0x269   : > { %1977 = vst [vmem:[#allocation2 + $0x60] sm:$0xff] %v4052_v22  ;;  %941 = vmax.xlane.f32.xlu0 %v940_v17  ;;  %v2898_v50 = vpop.eup %2897  ;;  %v1195_v62 = vmul.f32 1.442695, %v1107_v13 }
 0x26a   : > { %v2900_v16 = vpop.eup %2899  ;;  %v1573_v31 = vpack.c.bf16 %v2898_v50, %v4060_v7 }
 0x26b   : > { %v1574_v4 = vpack.c.bf16 %v2900_v16, %v4065_v51  ;;  %v4075_v61 = vadd.f32 %v2900_v16, %v2898_v50  ;;  %2901 = vpow2.f32 %v1195_v62 }
 0x26c   : > { %v900_v6 = vpop.xlane.xlu1 %899  ;;  %1756 = vmatmul.bf16.gmra.mxu2 %v1573_v31 }
 0x26d   : > { %v4078_v32 = vmax.f32 %v4069_v12, %v900_v6  ;;  %v4080_v17 = vpop.f32.mrf.mxu0  ;;  %1845 = vmatmul.bf16.gmra.mxu3 %v1574_v4  ;;  %v1197_v6 = vmul.f32 1.442695, %v1108_v39  ;;  %v4093_v4 = vld [vmem:[#allocation2 + $0x8] sm:$0xff] }
 0x26e   : > { %v4082_v36 = vpop.f32.mrf.mxu1  ;;  %4760 = vst [vmem:[#allocation53_spill] sm:$0xff] %v4093_v4 }
 0x26f   : > { %4758 = vst [vmem:[#allocation51_spill] sm:$0xff] %v4078_v32  ;;  %v1109_v22 = vsub.f32 %v3799_v52, %v4078_v32  ;;  %v1110_v50 = vsub.f32 %v3801_v53, %v4078_v32  ;;  %v943_v31 = vmax.f32 %v4080_v17, %v4082_v36  ;;  %2903 = vpow2.f32 %v1197_v6 }
 0x270   : > { %4759 = vst [vmem:[#allocation52_spill] sm:$0xff] %v4082_v36 }
 0x271   : > { %1978 = vst [vmem:[#allocation2 + $0xf0] sm:$0xff] %v4078_v32  ;;  %v1199_v16 = vmul.f32 1.442695, %v1109_v22  ;;  %v1201_v9 = vmul.f32 1.442695, %v1110_v50  ;;  %944 = vmax.xlane.f32.xlu1 %v943_v31  ;;  %v4104_v22 = vpop.eup %2901  ;;  %v4115_v31 = vld [vmem:[#allocation2 + $0x78] sm:$0xff] }
 0x273   : > { %2905 = vpow2.f32 %v1199_v16 }
 0x274   : > { %v903_v13 = vpop.xlane.xlu2 %902  ;;  %2907 = vpow2.f32 %v1201_v9 }
 0x275   : > { %v4096_v52 = vmax.f32 %v4093_v4, %v903_v13  ;;  %v4098_v53 = vpop.f32.mrf.mxu0  ;;  %v4109_v50 = vpop.eup %2903 }
 0x276   : > { %4762 = vst [vmem:[#allocation55_spill] sm:$0xff] %v4098_v53  ;;  %v4100_v37 = vpop.f32.mrf.mxu1 }
 0x277   : > { %4761 = vst [vmem:[#allocation54_spill] sm:$0xff] %v4096_v52  ;;  %v946_v39 = vmax.f32 %v4098_v53, %v4100_v37  ;;  %v1111_v6 = vsub.f32 %v3807_v0, %v4096_v52  ;;  %v1112_v13 = vsub.f32 %v3809_v1, %v4096_v52 }
 0x278   : > { %4763 = vst [vmem:[#allocation56_spill] sm:$0xff] %v4100_v37 }
 0x279   : > { %1979 = vst [vmem:[#allocation2 + $0x8] sm:$0xff] %v4096_v52  ;;  %947 = vmax.xlane.f32.xlu2 %v946_v39  ;;  %v4111_v9 = vpop.eup %2905  ;;  %v1203_v37 = vmul.f32 1.442695, %v1111_v6 }
 0x27a   : > { %v4117_v16 = vpop.eup %2907  ;;  %v1575_v62 = vpack.c.bf16 %v4111_v9, %v4104_v22 }
 0x27b   : > { %v1576_v4 = vpack.c.bf16 %v4117_v16, %v4109_v50  ;;  %2909 = vpow2.f32 %v1203_v37 }
 0x27c   : > { %v906_v32 = vpop.xlane.xlu0 %905  ;;  %1761 = vmatmul.bf16.gmra.mxu2 %v1575_v62 }
 0x27d   : > { %v4126_v39 = vmax.f32 %v4115_v31, %v906_v32  ;;  %v4128_v12 = vpop.f32.mrf.mxu0  ;;  %1850 = vmatmul.bf16.gmra.mxu3 %v1576_v4  ;;  %v1205_v32 = vmul.f32 1.442695, %v1112_v13  ;;  %v4142_v4 = vld [vmem:[#allocation2 + $0x38] sm:$0xff] }
 0x27e   : > { %v4130_v0 = vpop.f32.mrf.mxu1  ;;  %4765 = vst [vmem:[#allocation58_spill] sm:$0xff] %v4142_v4 }
 0x27f   : > { %4764 = vst [vmem:[#allocation57_spill] sm:$0xff] %v4126_v39  ;;  %v1113_v52 = vsub.f32 %v3818_v10, %v4126_v39  ;;  %v1114_v53 = vsub.f32 %v3820_v11, %v4126_v39  ;;  %v949_v62 = vmax.f32 %v4128_v12, %v4130_v0  ;;  %2911 = vpow2.f32 %v1205_v32  ;;  %v4166_v32 = vld [vmem:[#allocation2 + $0x58] sm:$0xff] }
 0x280   : > { %1980 = vst [vmem:[#allocation2 + $0x78] sm:$0xff] %v4126_v39 }
 0x281   : > { %1340 = vadd.xlane.f32.xlu2 %v3851_v47  ;;  %v1207_v36 = vmul.f32 1.442695, %v1113_v52  ;;  %v1209_v6 = vmul.f32 1.442695, %v1114_v53  ;;  %950 = vmax.xlane.f32.xlu0 %v949_v62  ;;  %v4156_v37 = vpop.eup %2909 }
 0x283   : > { %2913 = vpow2.f32 %v1207_v36 }
 0x284   : > { %v909_v1 = vpop.xlane.xlu1 %908  ;;  %2915 = vpow2.f32 %v1209_v6 }
 0x285   : > { %v4145_v10 = vmax.f32 %v4142_v4, %v909_v1  ;;  %v4147_v11 = vpop.f32.mrf.mxu0  ;;  %v4158_v53 = vpop.eup %2911 }
 0x286   : > { %v4149_v13 = vpop.f32.mrf.mxu1 }
 0x287   : > { %4766 = vst [vmem:[#allocation59_spill] sm:$0xff] %v4145_v10  ;;  %v952_v52 = vmax.f32 %v4147_v11, %v4149_v13  ;;  %v1115_v1 = vsub.f32 %v3836_v29, %v4145_v10  ;;  %v1116_v6 = vsub.f32 %v3838_v30, %v4145_v10 }
 0x288   : > { %1981 = vst [vmem:[#allocation2 + $0x38] sm:$0xff] %v4145_v10 }
 0x289   : > { %1349 = vadd.xlane.f32.xlu2 %v3911_v15  ;;  %953 = vmax.xlane.f32.xlu1 %v952_v52  ;;  %v4161_v36 = vpop.eup %2913  ;;  %v1211_v29 = vmul.f32 1.442695, %v1115_v1  ;;  %v1213_v10 = vmul.f32 1.442695, %v1116_v6  ;;  %v4189_v1 = vld [vmem:[#allocation2 + $0x40] sm:$0xff] }
 0x28a   : > { %1343 = vadd.xlane.f32.xlu0 %v3871_v18  ;;  %v4168_v62 = vpop.eup %2915  ;;  %v1577_v47 = vpack.c.bf16 %v4161_v36, %v4156_v37 }
 0x28b   : > { %v1578_v15 = vpack.c.bf16 %v4168_v62, %v4158_v53  ;;  %2917 = vpow2.f32 %v1211_v29 }
 0x28c   : > { %v912_v52 = vpop.xlane.xlu2 %911  ;;  %1766 = vmatmul.bf16.gmra.mxu2 %v1577_v47  ;;  %2919 = vpow2.f32 %v1213_v10 }
 0x28d   : > { %v4177_v4 = vmax.f32 %v4166_v32, %v912_v52  ;;  %1855 = vmatmul.bf16.gmra.mxu3 %v1578_v15 }
 0x28f   : > { %v1117_v39 = vsub.f32 %v3856_v14, %v4177_v4  ;;  %v1118_v30 = vsub.f32 %v3858_v49, %v4177_v4  ;;  %1982 = vst [vmem:[#allocation2 + $0x58] sm:$0xff] %v4177_v4  ;;  %v4767_v49 = vsub.f32 %v3813_v3, %v3816_v5  ;;  %v4211_v5 = vld [vmem:[#allocation2 + $0xc8] sm:$0xff] }
 0x291   : > { %1358 = vadd.xlane.f32.xlu2 %v3971_v34  ;;  %1346 = vadd.xlane.f32.xlu1 %v3891_v55  ;;  %v1215_v52 = vmul.f32 1.442695, %v1117_v39  ;;  %v1217_v47 = vmul.f32 1.442695, %v1118_v30  ;;  %v1019_v34 = vmul.f32 1.442695, %v4767_v49 }
 0x292   : > { %1352 = vadd.xlane.f32.xlu0 %v3931_v35  ;;  %v4200_v35 = vpop.eup %2917 }
 0x293   : > { %2921 = vpow2.f32 %v1215_v52  ;;  %v4202_v39 = vpop.eup %2919  ;;  %v4768_v52 = vsub.f32 %v3831_v24, %v3834_v28 }
 0x294   : > { %v915_v15 = vpop.xlane.xlu0 %914  ;;  %2923 = vpow2.f32 %v1217_v47  ;;  %v1375_v47 = vadd.f32 %v4109_v50, %v4104_v22  ;;  %v1369_v22 = vadd.f32 %v4065_v51, %v4060_v7 }
 0x295   : > { %v4192_v14 = vmax.f32 %v4189_v1, %v915_v15  ;;  %2925 = vpow2.f32 %v1019_v34 }
 0x297   : > { %1983 = vst [vmem:[#allocation2 + $0x40] sm:$0xff] %v4192_v14  ;;  %v1119_v3 = vsub.f32 %v3876_v21, %v4192_v14  ;;  %v1120_v29 = vsub.f32 %v3878_v19, %v4192_v14  ;;  %v1021_v21 = vmul.f32 1.442695, %v4768_v52 }
 0x299   : > { %1367 = vadd.xlane.f32.xlu2 %v4031_v8  ;;  %1355 = vadd.xlane.f32.xlu1 %v3954_v44  ;;  %v4206_v10 = vpop.eup %2921  ;;  %v1219_v15 = vmul.f32 1.442695, %v1119_v3  ;;  %v1221_v24 = vmul.f32 1.442695, %v1120_v29  ;;  %2927 = vpow2.f32 %v1021_v21 }
 0x29a   : > { %1361 = vadd.xlane.f32.xlu0 %v3991_v25  ;;  %v4213_v6 = vpop.eup %2923  ;;  %v1579_v8 = vpack.c.bf16 %v4206_v10, %v4200_v35 }
 0x29b   : > { %v1580_v44 = vpack.c.bf16 %v4213_v6, %v4202_v39  ;;  %v4236_v28 = vpop.eup %2925  ;;  %2929 = vpow2.f32 %v1219_v15  ;;  %v1384_v15 = vadd.f32 %v4168_v62, %v4161_v36  ;;  %v4262_v36 = vld [vmem:[#allocation2 + $0x90] sm:$0xff] }
 0x29c   : > { %v918_v30 = vpop.xlane.xlu1 %917  ;;  %1771 = vmatmul.bf16.gmra.mxu2 %v1579_v8  ;;  %v1499_v8 = vld [vmem:[#allocation4 + $0xb0] sm:$0xff]  ;;  %2931 = vpow2.f32 %v1221_v24  ;;  %v1378_v24 = vadd.f32 %v4117_v16, %v4111_v9 }
 0x29d   : > { %v4225_v25 = vmax.f32 %v4211_v5, %v918_v30  ;;  %1860 = vmatmul.bf16.gmra.mxu3 %v1580_v44  ;;  %v4241_v30 = vld [vmem:[#allocation2 + $0xe0] sm:$0xff] }
 0x29f   : > { %v1121_v49 = vsub.f32 %v3896_v26, %v4225_v25  ;;  %v1122_v34 = vsub.f32 %v3898_v59, %v4225_v25  ;;  %1984 = vst [vmem:[#allocation2 + $0xc8] sm:$0xff] %v4225_v25  ;;  %v1732_v50 = vpop.f32.mrf.mxu2  ;;  %v1531_v59 = vmul.f32 %v4236_v28, %v1499_v8  ;;  %v4250_v21 = vpop.eup %2927 }
 0x2a0   : > { %v1821_v26 = vpop.f32.mrf.mxu3 }
 0x2a1   : > { %1376 = vadd.xlane.f32.xlu2 %v1375_v47  ;;  %1364 = vadd.xlane.f32.xlu1 %v4011_v54  ;;  %v1223_v3 = vmul.f32 1.442695, %v1121_v49  ;;  %v1225_v44 = vmul.f32 1.442695, %v1122_v34  ;;  %v1822_v29 = vadd.f32 %v1821_v26, %v1732_v50  ;;  %v4769_v54 = vsub.f32 %v3849_v42, %v3854_v48  ;;  %v2930_v49 = vpop.eup %2929  ;;  %v1500_v34 = vld [vmem:[#allocation4 + $0xb8] sm:$0xff] }
 0x2a2   : > { %1370 = vadd.xlane.f32.xlu0 %v1369_v22  ;;  %v2932_v8 = vpop.eup %2931  ;;  %v1532_v9 = vmul.f32 %v4250_v21, %v1500_v34  ;;  %v4798_v47 = vld [vmem:[#allocation45_spill] sm:$0xff] }
 0x2a3   : > { %2933 = vpow2.f32 %v1223_v3  ;;  %v1901_v19 = vadd.f32 %v1822_v29, %v1531_v59  ;;  %v1023_v51 = vmul.f32 1.442695, %v4769_v54  ;;  %v1381_v54 = vadd.f32 %v4158_v53, %v4156_v37 }
 0x2a4   : > { %v921_v52 = vpop.xlane.xlu2 %920  ;;  %2935 = vpow2.f32 %v1225_v44  ;;  %v1387_v37 = vadd.f32 %v4202_v39, %v4200_v35  ;;  %v4771_v35 = vsub.f32 %v3889_v43, %v3894_v58  ;;  %v1502_v58 = vld [vmem:[#allocation4 + $0x10] sm:$0xff] }
 0x2a5   : > { %v4245_v7 = vmax.f32 %v4241_v30, %v921_v52  ;;  %1933 = vst [vmem:[#allocation4 + $0xb0] sm:$0xff] %v1901_v19  ;;  %2937 = vpow2.f32 %v1023_v51  ;;  %v1393_v52 = vadd.f32 %v2932_v8, %v2930_v49 }
 0x2a6   : > { %v1027_v39 = vmul.f32 1.442695, %v4771_v35 }
 0x2a7   : > { %1985 = vst [vmem:[#allocation2 + $0xe0] sm:$0xff] %v4245_v7  ;;  %v1734_v22 = vpop.f32.mrf.mxu2  ;;  %v1123_v48 = vsub.f32 %v3916_v33, %v4245_v7  ;;  %v1124_v50 = vsub.f32 %v3918_v60, %v4245_v7 }
 0x2a8   : > { %v1823_v19 = vpop.f32.mrf.mxu3 }
 0x2a9   : > { %1385 = vadd.xlane.f32.xlu2 %v1384_v15  ;;  %1373 = vadd.xlane.f32.xlu1 %v4075_v61  ;;  %v2934_v42 = vpop.eup %2933  ;;  %v1824_v16 = vadd.f32 %v1823_v19, %v1734_v22  ;;  %v4770_v61 = vsub.f32 %v3869_v2, %v3874_v20  ;;  %v1227_v60 = vmul.f32 1.442695, %v1123_v48  ;;  %v1229_v20 = vmul.f32 1.442695, %v1124_v50  ;;  %v4287_v48 = vld [vmem:[#allocation2 + $0x70] sm:$0xff] }
 0x2aa   : > { %1379 = vadd.xlane.f32.xlu0 %v1378_v24  ;;  %v2936_v62 = vpop.eup %2935  ;;  %v1581_v3 = vpack.c.bf16 %v2934_v42, %v2930_v49  ;;  %v1501_v49 = vld [vmem:[#allocation4 + $0xc0] sm:$0xff] }
 0x2ab   : > { %v1582_v44 = vpack.c.bf16 %v2936_v62, %v2932_v8  ;;  %v1025_v59 = vmul.f32 1.442695, %v4770_v61  ;;  %v1902_v29 = vadd.f32 %v1824_v16, %v1532_v9  ;;  %v4281_v34 = vpop.eup %2937 }
 0x2ac   : > { %v924_v26 = vpop.xlane.xlu0 %923  ;;  %1776 = vmatmul.bf16.gmra.mxu2 %v1581_v3  ;;  %v1390_v3 = vadd.f32 %v4213_v6, %v4206_v10  ;;  %v4306_v6 = vld [vmem:[#allocation2 + $0xc0] sm:$0xff] }
 0x2ad   : > { %v4271_v33 = vmax.f32 %v4262_v36, %v924_v26  ;;  %1934 = vst [vmem:[#allocation4 + $0xb8] sm:$0xff] %v1902_v29  ;;  %1865 = vmatmul.bf16.gmra.mxu3 %v1582_v44  ;;  %2939 = vpow2.f32 %v1025_v59  ;;  %v1396_v59 = vadd.f32 %v2936_v62, %v2934_v42 }
 0x2ae   : > { %2941 = vpow2.f32 %v1227_v60 }
 0x2af   : > { %v1125_v15 = vsub.f32 %v3936_v38, %v4271_v33  ;;  %v1126_v2 = vsub.f32 %v3938_v41, %v4271_v33  ;;  %1986 = vst [vmem:[#allocation2 + $0x90] sm:$0xff] %v4271_v33  ;;  %v1737_v53 = vpop.f32.mrf.mxu2  ;;  %v1533_v41 = vmul.f32 %v4281_v34, %v1501_v49  ;;  %2943 = vpow2.f32 %v1229_v20 }
 0x2b0   : > { %v1826_v22 = vpop.f32.mrf.mxu3 }
 0x2b1   : > { %1394 = vadd.xlane.f32.xlu2 %v1393_v52  ;;  %1382 = vadd.xlane.f32.xlu1 %v1381_v54  ;;  %v1231_v24 = vmul.f32 1.442695, %v1125_v15  ;;  %v1233_v8 = vmul.f32 1.442695, %v1126_v2  ;;  %v1827_v38 = vadd.f32 %v1826_v22, %v1737_v53 }
 0x2b2   : > { %1388 = vadd.xlane.f32.xlu0 %v1387_v37 }
 0x2b3   : > { %2945 = vpow2.f32 %v1231_v24  ;;  %v1903_v19 = vadd.f32 %v1827_v38, %v1533_v41  ;;  %v4295_v16 = vpop.eup %2939  ;;  %v4772_v24 = vld [vmem:[#allocation30_spill] sm:$0xff] }
 0x2b4   : > { %v927_v50 = vpop.xlane.xlu1 %926  ;;  %2947 = vpow2.f32 %v1233_v8  ;;  %v2942_v44 = vpop.eup %2941  ;;  %v4773_v8 = vld [vmem:[#allocation31_spill] sm:$0xff] }
 0x2b5   : > { %v4293_v9 = vmax.f32 %v4287_v48, %v927_v50  ;;  %1935 = vst [vmem:[#allocation4 + $0xc0] sm:$0xff] %v1903_v19  ;;  %v2944_v29 = vpop.eup %2943  ;;  %2949 = vpow2.f32 %v1027_v39  ;;  %v4774_v22 = vsub.f32 %v4772_v24, %v4773_v8  ;;  %v4775_v50 = vld [vmem:[#allocation38_spill] sm:$0xff]  ;;  %v4776_v39 = vld [vmem:[#allocation39_spill] sm:$0xff] }
 0x2b6   : > { %v1399_v38 = vadd.f32 %v2944_v29, %v2942_v44 }
 0x2b7   : > { %v1127_v61 = vsub.f32 %v3956_v45, %v4293_v9  ;;  %v1128_v43 = vsub.f32 %v3958_v40, %v4293_v9  ;;  %1987 = vst [vmem:[#allocation2 + $0x70] sm:$0xff] %v4293_v9  ;;  %v1739_v52 = vpop.f32.mrf.mxu2  ;;  %v1534_v45 = vmul.f32 %v4295_v16, %v1502_v58  ;;  %v1029_v41 = vmul.f32 1.442695, %v4774_v22 }
 0x2b8   : > { %v1828_v10 = vpop.f32.mrf.mxu3 }
 0x2b9   : > { %1391 = vadd.xlane.f32.xlu1 %v1390_v3  ;;  %v2946_v54 = vpop.eup %2945  ;;  %v1235_v60 = vmul.f32 1.442695, %v1127_v61  ;;  %v1237_v15 = vmul.f32 1.442695, %v1128_v43  ;;  %v1829_v20 = vadd.f32 %v1828_v10, %v1739_v52  ;;  %v1503_v43 = vld [vmem:[#allocation4 + $0x28] sm:$0xff] }
 0x2ba   : > { %1397 = vadd.xlane.f32.xlu0 %v1396_v59  ;;  %v2948_v2 = vpop.eup %2947  ;;  %v1583_v40 = vpack.c.bf16 %v2946_v54, %v2942_v44 }
 0x2bb   : > { %v1584_v49 = vpack.c.bf16 %v2948_v2, %v2944_v29  ;;  %v1402_v53 = vadd.f32 %v2948_v2, %v2946_v54  ;;  %v1904_v42 = vadd.f32 %v1829_v20, %v1534_v45  ;;  %2951 = vpow2.f32 %v1235_v60  ;;  %v4321_v61 = vpop.eup %2949  ;;  %v4325_v60 = vld [vmem:[#allocation2 + $0xa8] sm:$0xff] }
 0x2bc   : > { %v930_v37 = vpop.xlane.xlu2 %929  ;;  %1781 = vmatmul.bf16.gmra.mxu2 %v1583_v40  ;;  %2953 = vpow2.f32 %v1237_v15  ;;  %v1535_v54 = vmul.f32 %v4321_v61, %v1503_v43  ;;  %v4777_v40 = vld [vmem:[#allocation32_spill] sm:$0xff] }
 0x2bd   : > { %v4310_v62 = vmax.f32 %v4306_v6, %v930_v37  ;;  %1403 = vadd.xlane.f32.xlu2 %v1402_v53  ;;  %1936 = vst [vmem:[#allocation4 + $0x10] sm:$0xff] %v1904_v42  ;;  %1870 = vmatmul.bf16.gmra.mxu3 %v1584_v49  ;;  %2955 = vpow2.f32 %v1029_v41  ;;  %v4778_v49 = vld [vmem:[#allocation33_spill] sm:$0xff] }
 0x2be   : > { %v4779_v37 = vsub.f32 %v4777_v40, %v4778_v49  ;;  %v4781_v40 = vld [vmem:[#allocation35_spill] sm:$0xff] }
 0x2bf   : > { %v1129_v35 = vsub.f32 %v4775_v50, %v4310_v62  ;;  %v1130_v3 = vsub.f32 %v4776_v39, %v4310_v62  ;;  %1988 = vst [vmem:[#allocation2 + $0xc0] sm:$0xff] %v4310_v62  ;;  %v1742_v58 = vpop.f32.mrf.mxu2 }
 0x2c0   : > { %v1831_v29 = vpop.f32.mrf.mxu3  ;;  %v1031_v53 = vmul.f32 1.442695, %v4779_v37 }
 0x2c1   : > { %1400 = vadd.xlane.f32.xlu1 %v1399_v38  ;;  %v1239_v44 = vmul.f32 1.442695, %v1129_v35  ;;  %v1241_v59 = vmul.f32 1.442695, %v1130_v3  ;;  %v2952_v52 = vpop.eup %2951  ;;  %v1832_v10 = vadd.f32 %v1831_v29, %v1742_v58  ;;  %v1504_v38 = vld [vmem:[#allocation4 + $0x30] sm:$0xff] }
 0x2c2   : > { %v2954_v15 = vpop.eup %2953  ;;  %v4342_v3 = vld [vmem:[#allocation2 + $0xd0] sm:$0xff] }
 0x2c3   : > { %2957 = vpow2.f32 %v1239_v44  ;;  %v1905_v2 = vadd.f32 %v1832_v10, %v1535_v54  ;;  %v1405_v20 = vadd.f32 %v2954_v15, %v2952_v52  ;;  %v4333_v24 = vpop.eup %2955 }
 0x2c4   : > { %v933_v45 = vpop.xlane.xlu0 %932  ;;  %2959 = vpow2.f32 %v1241_v59  ;;  %v1536_v59 = vmul.f32 %v4333_v24, %v1504_v38  ;;  %v1505_v38 = vld [vmem:[#allocation4 + $0xd0] sm:$0xff] }
 0x2c5   : > { %v4331_v42 = vmax.f32 %v4325_v60, %v933_v45  ;;  %1937 = vst [vmem:[#allocation4 + $0x28] sm:$0xff] %v1905_v2  ;;  %1406 = vadd.xlane.f32.xlu0 %v1405_v20  ;;  %2961 = vpow2.f32 %v1031_v53  ;;  %v4780_v20 = vld [vmem:[#allocation34_spill] sm:$0xff]  ;;  %v4783_v53 = vld [vmem:[#allocation44_spill] sm:$0xff] }
 0x2c6   : > { %v4782_v49 = vsub.f32 %v4780_v20, %v4781_v40 }
 0x2c7   : > { %v1131_v22 = vsub.f32 %v3996_v56, %v4331_v42  ;;  %v1132_v41 = vsub.f32 %v3998_v57, %v4331_v42  ;;  %1989 = vst [vmem:[#allocation2 + $0xa8] sm:$0xff] %v4331_v42  ;;  %v1744_v50 = vpop.f32.mrf.mxu2 }
 0x2c8   : > { %v1833_v39 = vpop.f32.mrf.mxu3  ;;  %v1033_v37 = vmul.f32 1.442695, %v4782_v49 }
 0x2c9   : > { %v2958_v35 = vpop.eup %2957  ;;  %v1243_v43 = vmul.f32 1.442695, %v1131_v22  ;;  %v1245_v58 = vmul.f32 1.442695, %v1132_v41  ;;  %v1834_v29 = vadd.f32 %v1833_v39, %v1744_v50 }
 0x2ca   : > { %v2960_v44 = vpop.eup %2959  ;;  %v1585_v54 = vpack.c.bf16 %v2958_v35, %v2952_v52  ;;  %v4787_v52 = vld [vmem:[#allocation40_spill] sm:$0xff] }
 0x2cb   : > { %v1586_v56 = vpack.c.bf16 %v2960_v44, %v2954_v15  ;;  %v1408_v2 = vadd.f32 %v2960_v44, %v2958_v35  ;;  %v1906_v57 = vadd.f32 %v1834_v29, %v1536_v59  ;;  %2963 = vpow2.f32 %v1243_v43  ;;  %v4357_v41 = vpop.eup %2961  ;;  %v4361_v29 = vld [vmem:[#allocation2 + $0x10] sm:$0xff] }
 0x2cc   : > { %v936_v10 = vpop.xlane.xlu1 %935  ;;  %1786 = vmatmul.bf16.gmra.mxu2 %v1585_v54  ;;  %2965 = vpow2.f32 %v1245_v58  ;;  %v1537_v44 = vmul.f32 %v4357_v41, %v1505_v38  ;;  %v1506_v38 = vld [vmem:[#allocation4 + $0x68] sm:$0xff] }
 0x2cd   : > { %v4346_v45 = vmax.f32 %v4342_v3, %v936_v10  ;;  %1409 = vadd.xlane.f32.xlu1 %v1408_v2  ;;  %1938 = vst [vmem:[#allocation4 + $0x30] sm:$0xff] %v1906_v57  ;;  %1875 = vmatmul.bf16.gmra.mxu3 %v1586_v56  ;;  %2967 = vpow2.f32 %v1033_v37  ;;  %v4784_v2 = vld [vmem:[#allocation36_spill] sm:$0xff]  ;;  %v4785_v57 = vld [vmem:[#allocation37_spill] sm:$0xff] }
 0x2ce   : > { %v4786_v20 = vsub.f32 %v4784_v2, %v4785_v57 }
 0x2cf   : > { %v1133_v15 = vsub.f32 %v4016_v63, %v4346_v45  ;;  %v1134_v22 = vsub.f32 %v4783_v53, %v4346_v45  ;;  %1990 = vst [vmem:[#allocation2 + $0xd0] sm:$0xff] %v4346_v45  ;;  %v1747_v39 = vpop.f32.mrf.mxu2 }
 0x2d0   : > { %v1836_v43 = vpop.f32.mrf.mxu3  ;;  %v1035_v40 = vmul.f32 1.442695, %v4786_v20 }
 0x2d1   : > { %v1247_v50 = vmul.f32 1.442695, %v1133_v15  ;;  %v1249_v35 = vmul.f32 1.442695, %v1134_v22  ;;  %v2964_v58 = vpop.eup %2963  ;;  %v1837_v59 = vadd.f32 %v1836_v43, %v1747_v39  ;;  %v4378_v43 = vld [vmem:[#allocation2 + $0x28] sm:$0xff] }
 0x2d2   : > { %v2966_v63 = vpop.eup %2965 }
 0x2d3   : > { %2969 = vpow2.f32 %v1247_v50  ;;  %v1907_v54 = vadd.f32 %v1837_v59, %v1537_v44  ;;  %v1411_v10 = vadd.f32 %v2966_v63, %v2964_v58  ;;  %v4369_v37 = vpop.eup %2967 }
 0x2d4   : > { %2971 = vpow2.f32 %v1249_v35  ;;  %v939_v56 = vpop.xlane.xlu2 %938 }
 0x2d5   : > { %v4367_v49 = vmax.f32 %v4361_v29, %v939_v56  ;;  %1939 = vst [vmem:[#allocation4 + $0xd0] sm:$0xff] %v1907_v54  ;;  %1412 = vadd.xlane.f32.xlu2 %v1411_v10  ;;  %2973 = vpow2.f32 %v1035_v40  ;;  %v1538_v56 = vmul.f32 %v4369_v37, %v1506_v38  ;;  %v4788_v40 = vld [vmem:[#allocation41_spill] sm:$0xff] }
 0x2d6   : > { %v4789_v8 = vsub.f32 %v4787_v52, %v4788_v40  ;;  %v1507_v52 = vld [vmem:[#allocation4 + $0x58] sm:$0xff] }
 0x2d7   : > { %v1135_v53 = vsub.f32 %v4036_v46, %v4367_v49  ;;  %v1136_v22 = vsub.f32 %v4038_v27, %v4367_v49  ;;  %1991 = vst [vmem:[#allocation2 + $0x10] sm:$0xff] %v4367_v49  ;;  %v1749_v50 = vpop.f32.mrf.mxu2 }
 0x2d8   : > { %v1838_v39 = vpop.f32.mrf.mxu3  ;;  %v1037_v19 = vmul.f32 1.442695, %v4789_v8 }
 0x2d9   : > { %v2970_v35 = vpop.eup %2969  ;;  %v1251_v44 = vmul.f32 1.442695, %v1135_v53  ;;  %v1253_v59 = vmul.f32 1.442695, %v1136_v22  ;;  %v1839_v10 = vadd.f32 %v1838_v39, %v1749_v50  ;;  %v4790_v53 = vld [vmem:[#allocation49_spill] sm:$0xff] }
 0x2da   : > { %v2972_v54 = vpop.eup %2971  ;;  %v1587_v2 = vpack.c.bf16 %v2970_v35, %v2964_v58 }
 0x2db   : > { %v1588_v46 = vpack.c.bf16 %v2972_v54, %v2966_v63  ;;  %v1414_v20 = vadd.f32 %v2972_v54, %v2970_v35  ;;  %v1908_v27 = vadd.f32 %v1839_v10, %v1538_v56  ;;  %2975 = vpow2.f32 %v1251_v44  ;;  %v4393_v38 = vpop.eup %2973  ;;  %v4397_v56 = vld [vmem:[#allocation2 + $0xa0] sm:$0xff] }
 0x2dc   : > { %v942_v57 = vpop.xlane.xlu0 %941  ;;  %1791 = vmatmul.bf16.gmra.mxu2 %v1587_v2  ;;  %2977 = vpow2.f32 %v1253_v59  ;;  %v1539_v59 = vmul.f32 %v4393_v38, %v1507_v52  ;;  %v4795_v52 = vld [vmem:[#allocation52_spill] sm:$0xff] }
 0x2dd   : > { %v4382_v15 = vmax.f32 %v4378_v43, %v942_v57  ;;  %1415 = vadd.xlane.f32.xlu0 %v1414_v20  ;;  %1940 = vst [vmem:[#allocation4 + $0x68] sm:$0xff] %v1908_v27  ;;  %1880 = vmatmul.bf16.gmra.mxu3 %v1588_v46  ;;  %2979 = vpow2.f32 %v1037_v19  ;;  %v4791_v57 = vld [vmem:[#allocation42_spill] sm:$0xff]  ;;  %v4792_v20 = vld [vmem:[#allocation43_spill] sm:$0xff] }
 0x2de   : > { %v4793_v27 = vsub.f32 %v4791_v57, %v4792_v20 }
 0x2df   : > { %v1137_v63 = vsub.f32 %v4054_v23, %v4382_v15  ;;  %v1138_v22 = vsub.f32 %v4790_v53, %v4382_v15  ;;  %1992 = vst [vmem:[#allocation2 + $0x28] sm:$0xff] %v4382_v15  ;;  %v1752_v35 = vpop.f32.mrf.mxu2 }
 0x2e0   : > { %v1841_v39 = vpop.f32.mrf.mxu3  ;;  %v1039_v40 = vmul.f32 1.442695, %v4793_v27 }
 0x2e1   : > { %v1255_v8 = vmul.f32 1.442695, %v1137_v63  ;;  %v1257_v50 = vmul.f32 1.442695, %v1138_v22  ;;  %v2976_v44 = vpop.eup %2975  ;;  %v1842_v54 = vadd.f32 %v1841_v39, %v1752_v35 }
 0x2e2   : > { %v2978_v23 = vpop.eup %2977 }
 0x2e3   : > { %2981 = vpow2.f32 %v1255_v8  ;;  %v1909_v10 = vadd.f32 %v1842_v54, %v1539_v59  ;;  %v1417_v46 = vadd.f32 %v2978_v23, %v2976_v44  ;;  %v4405_v19 = vpop.eup %2979  ;;  %v4414_v54 = vld [vmem:[#allocation2 + $0xf8] sm:$0xff] }
 0x2e4   : > { %2983 = vpow2.f32 %v1257_v50  ;;  %v945_v2 = vpop.xlane.xlu1 %944  ;;  %v1508_v50 = vld [vmem:[#allocation4] sm:$0xff]  ;;  %4796 = vst [vmem:[#allocation31_spill] sm:$0xff] %v4414_v54 }
 0x2e5   : > { %v4403_v63 = vmax.f32 %v4397_v56, %v945_v2  ;;  %1941 = vst [vmem:[#allocation4 + $0x58] sm:$0xff] %v1909_v10  ;;  %1418 = vadd.xlane.f32.xlu1 %v1417_v46  ;;  %2985 = vpow2.f32 %v1039_v40  ;;  %v1540_v57 = vmul.f32 %v4405_v19, %v1508_v50  ;;  %v4799_v40 = vld [vmem:[#allocation46_spill] sm:$0xff] }
 0x2e6   : > { %v4800_v51 = vsub.f32 %v4798_v47, %v4799_v40  ;;  %v1509_v47 = vld [vmem:[#allocation4 + $0x48] sm:$0xff] }
 0x2e7   : > { %4794 = vst [vmem:[#allocation30_spill] sm:$0xff] %v4403_v63  ;;  %v1139_v22 = vsub.f32 %v4080_v17, %v4403_v63  ;;  %v1140_v8 = vsub.f32 %v4795_v52, %v4403_v63  ;;  %v1754_v35 = vpop.f32.mrf.mxu2 }
 0x2e8   : > { %1993 = vst [vmem:[#allocation2 + $0xa0] sm:$0xff] %v4403_v63  ;;  %v1843_v59 = vpop.f32.mrf.mxu3  ;;  %v1041_v18 = vmul.f32 1.442695, %v4800_v51  ;;  %v1275_v51 = vld [vmem:[#allocation3 + $0x80] sm:$0xff] }
 0x2e9   : > { %v2982_v39 = vpop.eup %2981  ;;  %v1259_v10 = vmul.f32 1.442695, %v1139_v22  ;;  %v1261_v2 = vmul.f32 1.442695, %v1140_v8  ;;  %v1844_v20 = vadd.f32 %v1843_v59, %v1754_v35  ;;  %v4802_v8 = vld [vmem:[#allocation56_spill] sm:$0xff] }
 0x2ea   : > { %v2984_v46 = vpop.eup %2983  ;;  %v1589_v27 = vpack.c.bf16 %v2982_v39, %v2976_v44 }
 0x2eb   : > { %v1590_v17 = vpack.c.bf16 %v2984_v46, %v2978_v23  ;;  %v1420_v53 = vadd.f32 %v2984_v46, %v2982_v39  ;;  %v1910_v52 = vadd.f32 %v1844_v20, %v1540_v57  ;;  %2987 = vpow2.f32 %v1259_v10  ;;  %v4801_v23 = vld [vmem:[#allocation55_spill] sm:$0xff]  ;;  %v4429_v50 = vpop.eup %2985  ;;  %v4434_v20 = vld [vmem:[#allocation2 + $0x20] sm:$0xff] }
 0x2ec   : > { %v948_v58 = vpop.xlane.xlu2 %947  ;;  %1796 = vmatmul.bf16.gmra.mxu2 %v1589_v27  ;;  %2989 = vpow2.f32 %v1261_v2  ;;  %v1541_v2 = vmul.f32 %v4429_v50, %v1509_v47  ;;  %v1307_v57 = vmul.f32 %v4236_v28, %v1275_v51  ;;  %4803 = vst [vmem:[#allocation39_spill] sm:$0xff] %v4434_v20 }
 0x2ed   : > { %v4418_v26 = vmax.f32 %v4414_v54, %v948_v58  ;;  %1421 = vadd.xlane.f32.xlu2 %v1420_v53  ;;  %1942 = vst [vmem:[#allocation4] sm:$0xff] %v1910_v52  ;;  %1885 = vmatmul.bf16.gmra.mxu3 %v1590_v17  ;;  %2991 = vpow2.f32 %v1041_v18 }
 0x2ef   : > { %4797 = vst [vmem:[#allocation38_spill] sm:$0xff] %v4418_v26  ;;  %v1141_v22 = vsub.f32 %v4801_v23, %v4418_v26  ;;  %v1142_v58 = vsub.f32 %v4802_v8, %v4418_v26  ;;  %v1757_v39 = vpop.f32.mrf.mxu2  ;;  %v4804_v8 = vld [vmem:[#allocation47_spill] sm:$0xff] }
 0x2f0   : > { %1994 = vst [vmem:[#allocation2 + $0xf8] sm:$0xff] %v4418_v26  ;;  %v1846_v59 = vpop.f32.mrf.mxu3 }
 0x2f1   : > { %v1263_v35 = vmul.f32 1.442695, %v1141_v22  ;;  %v1265_v53 = vmul.f32 1.442695, %v1142_v58  ;;  %v2988_v10 = vpop.eup %2987  ;;  %v1847_v46 = vadd.f32 %v1846_v59, %v1757_v39  ;;  %v4805_v58 = vld [vmem:[#allocation48_spill] sm:$0xff]  ;;  %v1278_v39 = vld [vmem:[#allocation3 + $0x78] sm:$0xff] }
 0x2f2   : > { %v2990_v27 = vpop.eup %2989  ;;  %v4806_v18 = vsub.f32 %v4804_v8, %v4805_v58 }
 0x2f3   : > { %2993 = vpow2.f32 %v1263_v35  ;;  %v1911_v52 = vadd.f32 %v1847_v46, %v1541_v2  ;;  %v1423_v23 = vadd.f32 %v2990_v27, %v2988_v10  ;;  %v4442_v28 = vpop.eup %2991  ;;  %v1276_v2 = vld [vmem:[#allocation3 + $0xc8] sm:$0xff] }
 0x2f4   : > { %v1341_v17 = vpop.xlane.xlu2 %1340  ;;  %2995 = vpow2.f32 %v1265_v53  ;;  %v951_v22 = vpop.xlane.xlu0 %950  ;;  %v1043_v44 = vmul.f32 1.442695, %v4806_v18  ;;  %v1510_v53 = vld [vmem:[#allocation4 + $0x40] sm:$0xff]  ;;  %v1308_v47 = vmul.f32 %v4250_v21, %v1276_v2  ;;  %v1281_v2 = vld [vmem:[#allocation3 + $0x58] sm:$0xff] }
 0x2f5   : > { %v1435_v40 = vadd.f32 %v1341_v17, %v1307_v57  ;;  %v4440_v55 = vmax.f32 %v4434_v20, %v951_v22  ;;  %1943 = vst [vmem:[#allocation4 + $0x48] sm:$0xff] %v1911_v52  ;;  %1424 = vadd.xlane.f32.xlu0 %v1423_v23  ;;  %v4451_v17 = vld [vmem:[#allocation2 + $0x98] sm:$0xff]  ;;  %v1542_v22 = vmul.f32 %v4442_v28, %v1510_v53 }
 0x2f6   : > { %2997 = vpow2.f32 %v1043_v44 }
 0x2f7   : > { %4807 = vst [vmem:[#allocation32_spill] sm:$0xff] %v4440_v55  ;;  %v1143_v51 = vsub.f32 %v4128_v12, %v4440_v55  ;;  %v1144_v35 = vsub.f32 %v4130_v0, %v4440_v55  ;;  %v1759_v59 = vpop.f32.mrf.mxu2  ;;  %v1310_v0 = vmul.f32 %v4295_v16, %v1278_v39  ;;  %v1511_v39 = vld [vmem:[#allocation4 + $0x78] sm:$0xff] }
 0x2f8   : > { %1467 = vst [vmem:[#allocation3 + $0x80] sm:$0xff] %v1435_v40  ;;  %v1848_v57 = vpop.f32.mrf.mxu3 }
 0x2f9   : > { %1995 = vst [vmem:[#allocation2 + $0x20] sm:$0xff] %v4440_v55  ;;  %v2994_v46 = vpop.eup %2993  ;;  %v1267_v52 = vmul.f32 1.442695, %v1143_v51  ;;  %v1269_v40 = vmul.f32 1.442695, %v1144_v35  ;;  %v1849_v12 = vadd.f32 %v1848_v57, %v1759_v59  ;;  %v4808_v51 = vld [vmem:[#allocation50_spill] sm:$0xff] }
 0x2fa   : > { %v2996_v23 = vpop.eup %2995  ;;  %v1591_v8 = vpack.c.bf16 %v2994_v46, %v2988_v10  ;;  %v4809_v35 = vld [vmem:[#allocation51_spill] sm:$0xff] }
 0x2fb   : > { %v1592_v58 = vpack.c.bf16 %v2996_v23, %v2990_v27  ;;  %v1426_v55 = vadd.f32 %v2996_v23, %v2994_v46  ;;  %v1912_v26 = vadd.f32 %v1849_v12, %v1542_v22  ;;  %2999 = vpow2.f32 %v1267_v52 }
 0x2fc   : > { %v1350_v18 = vpop.xlane.xlu2 %1349  ;;  %v954_v20 = vpop.xlane.xlu1 %953  ;;  %v4810_v53 = vsub.f32 %v4808_v51, %v4809_v35  ;;  %1801 = vmatmul.bf16.gmra.mxu2 %v1591_v8  ;;  %3001 = vpow2.f32 %v1269_v40  ;;  %v4811_v35 = vld [vmem:[#allocation53_spill] sm:$0xff] }
 0x2fd   : > { %v1438_v44 = vadd.f32 %v1350_v18, %v1310_v0  ;;  %v1344_v54 = vpop.xlane.xlu0 %1343  ;;  %v4457_v63 = vmax.f32 %v4451_v17, %v954_v20  ;;  %1427 = vadd.xlane.f32.xlu1 %v1426_v55  ;;  %1944 = vst [vmem:[#allocation4 + $0x40] sm:$0xff] %v1912_v26  ;;  %1890 = vmatmul.bf16.gmra.mxu3 %v1592_v58  ;;  %v4468_v27 = vpop.eup %2997  ;;  %v1277_v26 = vld [vmem:[#allocation3 + $0xe8] sm:$0xff] }
 0x2fe   : > { %v1045_v59 = vmul.f32 1.442695, %v4810_v53  ;;  %v1436_v10 = vadd.f32 %v1344_v54, %v1308_v47  ;;  %v1279_v47 = vld [vmem:[#allocation3 + $0x8] sm:$0xff]  ;;  %v1309_v8 = vmul.f32 %v4281_v34, %v1277_v26  ;;  %v4812_v53 = vld [vmem:[#allocation54_spill] sm:$0xff] }
 0x2ff   : > { %v1018_v21 = vsub.f32 %v4451_v17, %v4457_v63  ;;  %v1145_v16 = vsub.f32 %v4147_v11, %v4457_v63  ;;  %v1146_v20 = vsub.f32 %v4149_v13, %v4457_v63  ;;  %1470 = vst [vmem:[#allocation3 + $0x78] sm:$0xff] %v1438_v44  ;;  %v1762_v55 = vpop.f32.mrf.mxu2  ;;  %v1543_v11 = vmul.f32 %v4468_v27, %v1511_v39  ;;  %v1284_v39 = vld [vmem:[#allocation3 + $0xb0] sm:$0xff]  ;;  %v1527_v17 = vld [vmem:[#allocation4 + $0xc8] sm:$0xff] }
 0x300   : > { %1468 = vst [vmem:[#allocation3 + $0xc8] sm:$0xff] %v1436_v10  ;;  %3003 = vpow2.f32 %v1045_v59  ;;  %v1851_v57 = vpop.f32.mrf.mxu3  ;;  %v1313_v13 = vmul.f32 %v4357_v41, %v1281_v2  ;;  %v1311_v12 = vmul.f32 %v4321_v61, %v1279_v47  ;;  %v4813_v59 = vsub.f32 %v4811_v35, %v4812_v53  ;;  %v1512_v61 = vld [vmem:[#allocation4 + $0xd8] sm:$0xff]  ;;  %v1282_v2 = vld [vmem:[#allocation3 + $0xa8] sm:$0xff] }
 0x301   : > { %v1271_v54 = vmul.f32 1.442695, %v1145_v16  ;;  %v1273_v46 = vmul.f32 1.442695, %v1146_v20  ;;  %1996 = vst [vmem:[#allocation2 + $0x98] sm:$0xff] %v4457_v63  ;;  %v3000_v52 = vpop.eup %2999  ;;  %v1852_v40 = vadd.f32 %v1851_v57, %v1762_v55  ;;  %v4814_v35 = vld [vmem:[#allocation57_spill] sm:$0xff] }
 0x302   : > { %v3002_v23 = vpop.eup %3001  ;;  %v1047_v10 = vmul.f32 1.442695, %v4813_v59  ;;  %v4815_v53 = vsub.f32 %v4115_v31, %v4814_v35  ;;  %v1306_v63 = vld [vmem:[#allocation3 + $0x98] sm:$0xff] }
 0x303   : > { %3005 = vpow2.f32 %v1271_v54  ;;  %v1913_v58 = vadd.f32 %v1852_v40, %v1543_v11  ;;  %v1429_v44 = vadd.f32 %v3002_v23, %v3000_v52  ;;  %v1280_v54 = vld [vmem:[#allocation3 + $0x90] sm:$0xff]  ;;  %v1316_v11 = vmul.f32 %v4405_v19, %v1284_v39 }
 0x304   : > { %v1359_v22 = vpop.xlane.xlu2 %1358  ;;  %v1347_v0 = vpop.xlane.xlu1 %1346  ;;  %3007 = vpow2.f32 %v1273_v46  ;;  %v1049_v59 = vmul.f32 1.442695, %v4815_v53 }
 0x305   : > { %v1441_v18 = vadd.f32 %v1359_v22, %v1313_v13  ;;  %v1353_v51 = vpop.xlane.xlu0 %1352  ;;  %v1437_v20 = vadd.f32 %v1347_v0, %v1309_v8  ;;  %1945 = vst [vmem:[#allocation4 + $0x78] sm:$0xff] %v1913_v58  ;;  %1430 = vadd.xlane.f32.xlu2 %v1429_v44  ;;  %3009 = vpow2.f32 %v1047_v10  ;;  %v1314_v22 = vmul.f32 %v4369_v37, %v1282_v2  ;;  %v1513_v37 = vld [vmem:[#allocation4 + $0xe0] sm:$0xff] }
 0x306   : > { %v1439_v16 = vadd.f32 %v1353_v51, %v1311_v12  ;;  %v4478_v41 = vpop.eup %3003  ;;  %v1312_v0 = vmul.f32 %v4333_v24, %v1280_v54  ;;  %3011 = vpow2.f32 %v1049_v59 }
 0x307   : > { %1473 = vst [vmem:[#allocation3 + $0x58] sm:$0xff] %v1441_v18  ;;  %v1764_v34 = vpop.f32.mrf.mxu2  ;;  %v1544_v46 = vmul.f32 %v4478_v41, %v1512_v61 }
 0x308   : > { %1471 = vst [vmem:[#allocation3 + $0x8] sm:$0xff] %v1439_v16  ;;  %v1853_v47 = vpop.f32.mrf.mxu3  ;;  %v1285_v16 = vld [vmem:[#allocation3 + $0x38] sm:$0xff] }
 0x309   : > { %v3006_v55 = vpop.eup %3005  ;;  %1469 = vst [vmem:[#allocation3 + $0xe8] sm:$0xff] %v1437_v20  ;;  %v1854_v57 = vadd.f32 %v1853_v47, %v1764_v34  ;;  %v1283_v20 = vld [vmem:[#allocation3 + $0xd0] sm:$0xff]  ;;  %v1317_v54 = vmul.f32 %v4429_v50, %v1285_v16  ;;  %v1514_v50 = vld [vmem:[#allocation4 + $0x80] sm:$0xff] }
 0x30a   : > { %v3008_v26 = vpop.eup %3007  ;;  %v1593_v40 = vpack.c.bf16 %v3006_v55, %v3000_v52 }
 0x30b   : > { %v1594_v12 = vpack.c.bf16 %v3008_v26, %v3002_v23  ;;  %v1432_v8 = vadd.f32 %v3008_v26, %v3006_v55  ;;  %v1914_v18 = vadd.f32 %v1854_v57, %v1544_v46  ;;  %v4487_v52 = vpop.eup %3009  ;;  %v1287_v23 = vld [vmem:[#allocation3 + $0xe0] sm:$0xff]  ;;  %v1315_v55 = vmul.f32 %v4393_v38, %v1283_v20  ;;  %v4817_v46 = vld [vmem:[#allocation59_spill] sm:$0xff] }
 0x30c   : > { %v1368_v13 = vpop.xlane.xlu2 %1367  ;;  %v1356_v58 = vpop.xlane.xlu1 %1355  ;;  %1806 = vmatmul.bf16.gmra.mxu2 %v1593_v40  ;;  %v1545_v31 = vmul.f32 %v4487_v52, %v1513_v37  ;;  %v1319_v34 = vmul.f32 %v4468_v27, %v1287_v23  ;;  %v4816_v26 = vld [vmem:[#allocation58_spill] sm:$0xff]  ;;  %v4820_v20 = vsub.f32 %v4166_v32, %v4177_v4 }
 0x30d   : > { %v1444_v44 = vadd.f32 %v1368_v13, %v1316_v11  ;;  %v1362_v51 = vpop.xlane.xlu0 %1361  ;;  %1433 = vadd.xlane.f32.xlu0 %v1432_v8  ;;  %v1440_v19 = vadd.f32 %v1356_v58, %v1312_v0  ;;  %1946 = vst [vmem:[#allocation4 + $0xd8] sm:$0xff] %v1914_v18  ;;  %1895 = vmatmul.bf16.gmra.mxu3 %v1594_v12  ;;  %v3012_v27 = vpop.eup %3011  ;;  %v1290_v18 = vld [vmem:[#allocation3 + $0x68] sm:$0xff] }
 0x30e   : > { %v1442_v10 = vadd.f32 %v1362_v51, %v1314_v22  ;;  %v4818_v57 = vsub.f32 %v4816_v26, %v4817_v46  ;;  %v4819_v12 = vsub.f32 %v4189_v1, %v4192_v14  ;;  %v1286_v51 = vld [vmem:[#allocation3 + $0x40] sm:$0xff]  ;;  %v1546_v53 = vmul.f32 %v3012_v27, %v1514_v50  ;;  %v1291_v26 = vld [vmem:[#allocation3 + $0x10] sm:$0xff]  ;;  %v1289_v46 = vld [vmem:[#allocation3 + $0x18] sm:$0xff] }
 0x30f   : > { %1476 = vst [vmem:[#allocation3 + $0xb0] sm:$0xff] %v1444_v44  ;;  %v1767_v24 = vpop.f32.mrf.mxu2  ;;  %v1288_v44 = vld [vmem:[#allocation3 + $0x60] sm:$0xff] }
 0x310   : > { %1474 = vst [vmem:[#allocation3 + $0xa8] sm:$0xff] %v1442_v10  ;;  %v1856_v61 = vpop.f32.mrf.mxu3  ;;  %v1051_v11 = vmul.f32 1.442695, %v4818_v57  ;;  %v1055_v8 = vmul.f32 1.442695, %v4819_v12  ;;  %v1322_v10 = vmul.f32 %v3012_v27, %v1290_v18  ;;  %v1320_v14 = vmul.f32 %v4478_v41, %v1288_v44  ;;  %v1292_v44 = vld [vmem:[#allocation3 + $0x70] sm:$0xff] }
 0x311   : > { %1472 = vst [vmem:[#allocation3 + $0x90] sm:$0xff] %v1440_v19  ;;  %v1857_v39 = vadd.f32 %v1856_v61, %v1767_v24  ;;  %v1318_v19 = vmul.f32 %v4442_v28, %v1286_v51  ;;  %v1053_v61 = vmul.f32 1.442695, %v4820_v20  ;;  %v1293_v28 = vld [vmem:[#allocation3 + $0x50] sm:$0xff]  ;;  %v4822_v57 = vsub.f32 %v4262_v36, %v4271_v33  ;;  %v1516_v33 = vld [vmem:[#allocation4 + $0x18] sm:$0xff] }
 0x312   : > { %3013 = vpow2.f32 %v1051_v11  ;;  %v4823_v27 = vsub.f32 %v4241_v30, %v4245_v7  ;;  %v4824_v30 = vsub.f32 %v4287_v48, %v4293_v9  ;;  %v1296_v20 = vld [vmem:[#allocation3 + $0x30] sm:$0xff] }
 0x313   : > { %v1915_v40 = vadd.f32 %v1857_v39, %v1545_v31  ;;  %3015 = vpow2.f32 %v1055_v8 }
 0x314   : > { %v1377_v2 = vpop.xlane.xlu2 %1376  ;;  %v1365_v47 = vpop.xlane.xlu1 %1364  ;;  %3017 = vpow2.f32 %v1053_v61  ;;  %v1059_v50 = vmul.f32 1.442695, %v4823_v27  ;;  %v1063_v7 = vmul.f32 1.442695, %v4824_v30  ;;  %v1520_v30 = vld [vmem:[#allocation4 + $0x20] sm:$0xff] }
 0x315   : > { %v1447_v13 = vadd.f32 %v1377_v2, %v1319_v34  ;;  %v1371_v22 = vpop.xlane.xlu0 %1370  ;;  %v1443_v58 = vadd.f32 %v1365_v47, %v1315_v55  ;;  %1947 = vst [vmem:[#allocation4 + $0xe0] sm:$0xff] %v1915_v40  ;;  %v4821_v2 = vsub.f32 %v4211_v5, %v4225_v25  ;;  %v1515_v55 = vld [vmem:[#allocation4 + $0xa0] sm:$0xff]  ;;  %v1061_v5 = vmul.f32 1.442695, %v4822_v57 }
 0x316   : > { %v1445_v0 = vadd.f32 %v1371_v22, %v1317_v54  ;;  %v1321_v22 = vmul.f32 %v4487_v52, %v1289_v46  ;;  %v1294_v52 = vld [vmem:[#allocation3 + $0xa0] sm:$0xff] }
 0x317   : > { %1479 = vst [vmem:[#allocation3 + $0xe0] sm:$0xff] %v1447_v13  ;;  %v1769_v38 = vpop.f32.mrf.mxu2  ;;  %v1057_v54 = vmul.f32 1.442695, %v4821_v2  ;;  %v1295_v2 = vld [vmem:[#allocation3 + $0xd8] sm:$0xff] }
 0x318   : > { %1477 = vst [vmem:[#allocation3 + $0x38] sm:$0xff] %v1445_v0  ;;  %v1858_v35 = vpop.f32.mrf.mxu3  ;;  %v3014_v34 = vpop.eup %3013 }
 0x319   : > { %1475 = vst [vmem:[#allocation3 + $0xd0] sm:$0xff] %v1443_v58  ;;  %v1859_v59 = vadd.f32 %v1858_v35, %v1769_v38  ;;  %v4507_v41 = vpop.eup %3015  ;;  %v1547_v4 = vmul.f32 %v3014_v34, %v1515_v55  ;;  %3019 = vpow2.f32 %v1057_v54  ;;  %v1323_v13 = vmul.f32 %v3014_v34, %v1291_v26 }
 0x31a   : > { %v1325_v11 = vmul.f32 %v4507_v41, %v1293_v28  ;;  %3021 = vpow2.f32 %v1061_v5  ;;  %v3018_v36 = vpop.eup %3017  ;;  %v4825_v28 = vsub.f32 %v4306_v6, %v4310_v62 }
 0x31b   : > { %v1916_v23 = vadd.f32 %v1859_v59, %v1546_v53  ;;  %3023 = vpow2.f32 %v1059_v50  ;;  %v1548_v59 = vmul.f32 %v3018_v36, %v1516_v33 }
 0x31c   : > { %v1386_v1 = vpop.xlane.xlu2 %1385  ;;  %v1374_v37 = vpop.xlane.xlu1 %1373  ;;  %3025 = vpow2.f32 %v1063_v7 }
 0x31d   : > { %v1450_v24 = vadd.f32 %v1386_v1, %v1322_v10  ;;  %v1380_v16 = vpop.xlane.xlu0 %1379  ;;  %v1446_v39 = vadd.f32 %v1374_v37, %v1318_v19  ;;  %1948 = vst [vmem:[#allocation4 + $0x80] sm:$0xff] %v1916_v23  ;;  %v1324_v1 = vmul.f32 %v3018_v36, %v1292_v44 }
 0x31e   : > { %v1448_v31 = vadd.f32 %v1380_v16, %v1320_v14 }
 0x31f   : > { %1482 = vst [vmem:[#allocation3 + $0x68] sm:$0xff] %v1450_v24  ;;  %v1772_v47 = vpop.f32.mrf.mxu2  ;;  %v3020_v51 = vpop.eup %3019 }
 0x320   : > { %1480 = vst [vmem:[#allocation3 + $0x60] sm:$0xff] %v1448_v31  ;;  %v1861_v32 = vpop.f32.mrf.mxu3  ;;  %v1326_v14 = vmul.f32 %v3020_v51, %v1294_v52  ;;  %v4520_v37 = vpop.eup %3021 }
 0x321   : > { %1478 = vst [vmem:[#allocation3 + $0x40] sm:$0xff] %v1446_v39  ;;  %v1862_v25 = vadd.f32 %v1861_v32, %v1772_v47  ;;  %v3024_v31 = vpop.eup %3023  ;;  %v1517_v39 = vld [vmem:[#allocation4 + $0xf8] sm:$0xff]  ;;  %v1328_v34 = vmul.f32 %v4520_v37, %v1296_v20  ;;  %v1065_v47 = vmul.f32 1.442695, %v4825_v28 }
 0x322   : > { %v1549_v26 = vmul.f32 %v4507_v41, %v1517_v39  ;;  %v4826_v41 = vsub.f32 %v4325_v60, %v4331_v42  ;;  %v1300_v39 = vld [vmem:[#allocation3 + $0x48] sm:$0xff] }
 0x323   : > { %v1917_v8 = vadd.f32 %v1862_v25, %v1547_v4  ;;  %v1327_v4 = vmul.f32 %v3024_v31, %v1295_v2  ;;  %v3026_v25 = vpop.eup %3025  ;;  %3027 = vpow2.f32 %v1065_v47 }
 0x324   : > { %v1395_v40 = vpop.xlane.xlu2 %1394  ;;  %v1383_v12 = vpop.xlane.xlu1 %1382 }
 0x325   : > { %v1453_v0 = vadd.f32 %v1395_v40, %v1325_v11  ;;  %v1389_v58 = vpop.xlane.xlu0 %1388  ;;  %v1449_v38 = vadd.f32 %v1383_v12, %v1321_v22  ;;  %1949 = vst [vmem:[#allocation4 + $0xa0] sm:$0xff] %v1917_v8  ;;  %v1297_v11 = vld [vmem:[#allocation3 + $0x20] sm:$0xff]  ;;  %v1518_v40 = vld [vmem:[#allocation4 + $0xe8] sm:$0xff] }
 0x326   : > { %v1451_v18 = vadd.f32 %v1389_v58, %v1323_v13  ;;  %v1329_v22 = vmul.f32 %v3026_v25, %v1297_v11  ;;  %v1550_v6 = vmul.f32 %v3020_v51, %v1518_v40  ;;  %v1067_v58 = vmul.f32 1.442695, %v4826_v41 }
 0x327   : > { %1485 = vst [vmem:[#allocation3 + $0x50] sm:$0xff] %v1453_v0  ;;  %v1774_v35 = vpop.f32.mrf.mxu2  ;;  %v4827_v51 = vsub.f32 %v4342_v3, %v4346_v45  ;;  %v4828_v3 = vsub.f32 %v4361_v29, %v4367_v49 }
 0x328   : > { %1483 = vst [vmem:[#allocation3 + $0x10] sm:$0xff] %v1451_v18  ;;  %v1863_v53 = vpop.f32.mrf.mxu3  ;;  %v1298_v18 = vld [vmem:[#allocation3 + $0xf0] sm:$0xff]  ;;  %3029 = vpow2.f32 %v1067_v58 }
 0x329   : > { %1481 = vst [vmem:[#allocation3 + $0x18] sm:$0xff] %v1449_v38  ;;  %v1864_v10 = vadd.f32 %v1863_v53, %v1774_v35  ;;  %v3028_v27 = vpop.eup %3027  ;;  %v1519_v38 = vld [vmem:[#allocation4 + $0x90] sm:$0xff]  ;;  %v1069_v53 = vmul.f32 1.442695, %v4827_v51  ;;  %v1071_v45 = vmul.f32 1.442695, %v4828_v3 }
 0x32a   : > { %v1330_v36 = vmul.f32 %v3028_v27, %v1298_v18  ;;  %v1303_v51 = vld [vmem:[#allocation3 + $0xb8] sm:$0xff]  ;;  %v1304_v3 = vld [vmem:[#allocation3] sm:$0xff] }
 0x32b   : > { %v1918_v23 = vadd.f32 %v1864_v10, %v1548_v59  ;;  %v1551_v59 = vmul.f32 %v3024_v31, %v1519_v38  ;;  %3031 = vpow2.f32 %v1069_v53  ;;  %v4832_v38 = vld [vmem:[#allocation31_spill] sm:$0xff]  ;;  %v1524_v53 = vld [vmem:[#allocation4 + $0xf0] sm:$0xff] }
 0x32c   : > { %v1392_v19 = vpop.xlane.xlu1 %1391  ;;  %3033 = vpow2.f32 %v1071_v45  ;;  %v1525_v45 = vld [vmem:[#allocation4 + $0x50] sm:$0xff] }
 0x32d   : > { %v1398_v24 = vpop.xlane.xlu0 %1397  ;;  %v1452_v16 = vadd.f32 %v1392_v19, %v1324_v1  ;;  %1950 = vst [vmem:[#allocation4 + $0x18] sm:$0xff] %v1918_v23  ;;  %v1299_v1 = vld [vmem:[#allocation3 + $0x88] sm:$0xff] }
 0x32e   : > { %v1454_v61 = vadd.f32 %v1398_v24, %v1326_v14  ;;  %v3030_v42 = vpop.eup %3029  ;;  %v1552_v24 = vmul.f32 %v4520_v37, %v1520_v30  ;;  %v4829_v37 = vsub.f32 %v4378_v43, %v4382_v15 }
 0x32f   : > { %1484 = vst [vmem:[#allocation3 + $0x70] sm:$0xff] %v1452_v16  ;;  %v1777_v48 = vpop.f32.mrf.mxu2  ;;  %v1331_v14 = vmul.f32 %v3030_v42, %v1299_v1 }
 0x330   : > { %1486 = vst [vmem:[#allocation3 + $0xa0] sm:$0xff] %v1454_v61  ;;  %v1404_v9 = vpop.xlane.xlu2 %1403  ;;  %v1866_v54 = vpop.f32.mrf.mxu3  ;;  %v1073_v28 = vmul.f32 1.442695, %v4829_v37 }
 0x331   : > { %v1456_v55 = vadd.f32 %v1404_v9, %v1328_v34  ;;  %v1867_v46 = vadd.f32 %v1866_v54, %v1777_v48  ;;  %v3032_v61 = vpop.eup %3031  ;;  %v1521_v34 = vld [vmem:[#allocation4 + $0x38] sm:$0xff] }
 0x332   : > { %v1332_v2 = vmul.f32 %v3032_v61, %v1300_v39  ;;  %v1553_v47 = vmul.f32 %v3026_v25, %v1521_v34  ;;  %v3034_v49 = vpop.eup %3033  ;;  %3035 = vpow2.f32 %v1073_v28  ;;  %v1556_v30 = vmul.f32 %v3032_v61, %v1524_v53  ;;  %v1305_v28 = vld [vmem:[#allocation3 + $0x28] sm:$0xff] }
 0x333   : > { %1488 = vst [vmem:[#allocation3 + $0x30] sm:$0xff] %v1456_v55  ;;  %v1919_v57 = vadd.f32 %v1867_v46, %v1549_v26  ;;  %v1301_v46 = vld [vmem:[#allocation3 + $0xf8] sm:$0xff]  ;;  %v1081_v61 = vmul.f32 1.442695, %v1018_v21 }
 0x334   : > { %v1401_v32 = vpop.xlane.xlu1 %1400 }
 0x335   : > { %v1455_v5 = vadd.f32 %v1401_v32, %v1327_v4  ;;  %1951 = vst [vmem:[#allocation4 + $0xf8] sm:$0xff] %v1919_v57  ;;  %v1522_v4 = vld [vmem:[#allocation4 + $0x70] sm:$0xff]  ;;  %v1333_v57 = vmul.f32 %v3034_v49, %v1301_v46 }
 0x336   : > { %v1554_v40 = vmul.f32 %v3028_v27, %v1522_v4  ;;  %v4833_v27 = vld [vmem:[#allocation38_spill] sm:$0xff] }
 0x337   : > { %1487 = vst [vmem:[#allocation3 + $0xd8] sm:$0xff] %v1455_v5  ;;  %v1779_v13 = vpop.f32.mrf.mxu2 }
 0x338   : > { %v1868_v12 = vpop.f32.mrf.mxu3  ;;  %v1407_v8 = vpop.xlane.xlu0 %1406 }
 0x339   : > { %v1869_v62 = vadd.f32 %v1868_v12, %v1779_v13  ;;  %v1457_v0 = vadd.f32 %v1407_v8, %v1329_v22  ;;  %v4830_v12 = vld [vmem:[#allocation30_spill] sm:$0xff]  ;;  %v3036_v25 = vpop.eup %3035 }
 0x33a   : > { %v4831_v15 = vsub.f32 %v4397_v56, %v4830_v12 }
 0x33b   : > { %v1920_v50 = vadd.f32 %v1869_v62, %v1550_v6  ;;  %1489 = vst [vmem:[#allocation3 + $0x20] sm:$0xff] %v1457_v0  ;;  %v1302_v6 = vld [vmem:[#allocation3 + $0xc0] sm:$0xff]  ;;  %v1523_v62 = vld [vmem:[#allocation4 + $0xa8] sm:$0xff] }
 0x33c   : > { %v1075_v43 = vmul.f32 1.442695, %v4831_v15  ;;  %v1334_v0 = vmul.f32 %v3036_v25, %v1302_v6  ;;  %v1528_v6 = vld [vmem:[#allocation4 + $0x98] sm:$0xff] }
 0x33d   : > { %1952 = vst [vmem:[#allocation4 + $0xe8] sm:$0xff] %v1920_v50 }
 0x33e   : > { %3037 = vpow2.f32 %v1075_v43 }
 0x33f   : > { %v1782_v33 = vpop.f32.mrf.mxu2 }
 0x340   : > { %v1410_v44 = vpop.xlane.xlu1 %1409  ;;  %v1871_v35 = vpop.f32.mrf.mxu3 }
 0x341   : > { %v1458_v52 = vadd.f32 %v1410_v44, %v1330_v36  ;;  %v1872_v10 = vadd.f32 %v1871_v35, %v1782_v33  ;;  %v4834_v36 = vsub.f32 %v4832_v38, %v4833_v27  ;;  %v1555_v44 = vmul.f32 %v3030_v42, %v1523_v62 }
 0x343   : > { %1490 = vst [vmem:[#allocation3 + $0xf0] sm:$0xff] %v1458_v52  ;;  %v1921_v60 = vadd.f32 %v1872_v10, %v1551_v59  ;;  %v1077_v33 = vmul.f32 1.442695, %v4834_v36 }
 0x344   : > { %v3038_v52 = vpop.eup %3037 }
 0x345   : > { %1953 = vst [vmem:[#allocation4 + $0x90] sm:$0xff] %v1921_v60  ;;  %3039 = vpow2.f32 %v1077_v33  ;;  %v1335_v10 = vmul.f32 %v3038_v52, %v1303_v51  ;;  %v1559_v15 = vmul.f32 %v3038_v52, %v1527_v17 }
 0x347   : > { %v1784_v7 = vpop.f32.mrf.mxu2 }
 0x348   : > { %v1873_v19 = vpop.f32.mrf.mxu3  ;;  %v1413_v23 = vpop.xlane.xlu2 %1412 }
 0x349   : > { %v1874_v16 = vadd.f32 %v1873_v19, %v1784_v7  ;;  %v1459_v20 = vadd.f32 %v1413_v23, %v1331_v14  ;;  %v4835_v19 = vld [vmem:[#allocation39_spill] sm:$0xff]  ;;  %v4836_v23 = vld [vmem:[#allocation32_spill] sm:$0xff] }
 0x34b   : > { %v1922_v31 = vadd.f32 %v1874_v16, %v1552_v24  ;;  %1491 = vst [vmem:[#allocation3 + $0x88] sm:$0xff] %v1459_v20  ;;  %v4837_v24 = vsub.f32 %v4835_v19, %v4836_v23  ;;  %v3040_v42 = vpop.eup %3039 }
 0x34d   : > { %1954 = vst [vmem:[#allocation4 + $0x20] sm:$0xff] %v1922_v31  ;;  %v1079_v16 = vmul.f32 1.442695, %v4837_v24  ;;  %v1336_v31 = vmul.f32 %v3040_v42, %v1304_v3 }
 0x34f   : > { %v1787_v48 = vpop.f32.mrf.mxu2  ;;  %3041 = vpow2.f32 %v1079_v16 }
 0x350   : > { %v1416_v9 = vpop.xlane.xlu0 %1415  ;;  %v1876_v54 = vpop.f32.mrf.mxu3  ;;  %3043 = vpow2.f32 %v1081_v61 }
 0x351   : > { %v1460_v55 = vadd.f32 %v1416_v9, %v1332_v2  ;;  %v1877_v26 = vadd.f32 %v1876_v54, %v1787_v48  ;;  %v1557_v9 = vmul.f32 %v3034_v49, %v1525_v45 }
 0x353   : > { %1492 = vst [vmem:[#allocation3 + $0x48] sm:$0xff] %v1460_v55  ;;  %v1923_v29 = vadd.f32 %v1877_v26, %v1553_v47  ;;  %v1526_v47 = vld [vmem:[#allocation4 + $0x88] sm:$0xff] }
 0x355   : > { %1955 = vst [vmem:[#allocation4 + $0x38] sm:$0xff] %v1923_v29  ;;  %v3042_v37 = vpop.eup %3041 }
 0x356   : > { %v1337_v29 = vmul.f32 %v3042_v37, %v1305_v28 }
 0x357   : > { %v1789_v32 = vpop.f32.mrf.mxu2 }
 0x358   : > { %v1878_v5 = vpop.f32.mrf.mxu3  ;;  %v1419_v11 = vpop.xlane.xlu1 %1418 }
 0x359   : > { %v1879_v13 = vadd.f32 %v1878_v5, %v1789_v32  ;;  %v1461_v22 = vadd.f32 %v1419_v11, %v1333_v57  ;;  %v1558_v32 = vmul.f32 %v3036_v25, %v1526_v47  ;;  %v3044_v11 = vpop.eup %3043 }
 0x35a   : > { %v1338_v21 = vmul.f32 %v3044_v11, %v1306_v63 }
 0x35b   : > { %v1924_v8 = vadd.f32 %v1879_v13, %v1554_v40  ;;  %1493 = vst [vmem:[#allocation3 + $0xf8] sm:$0xff] %v1461_v22 }
 0x35d   : > { %1956 = vst [vmem:[#allocation4 + $0x70] sm:$0xff] %v1924_v8 }
 0x35f   : > { %v1792_v41 = vpop.f32.mrf.mxu2 }
 0x360   : > { %v1422_v58 = vpop.xlane.xlu2 %1421  ;;  %v1881_v50 = vpop.f32.mrf.mxu3 }
 0x361   : > { %v1462_v18 = vadd.f32 %v1422_v58, %v1334_v0  ;;  %v1882_v35 = vadd.f32 %v1881_v50, %v1792_v41  ;;  %v1560_v0 = vmul.f32 %v3040_v42, %v1528_v6  ;;  %v1529_v50 = vld [vmem:[#allocation4 + $0x60] sm:$0xff] }
 0x362   : > { %v1561_v27 = vmul.f32 %v3042_v37, %v1529_v50 }
 0x363   : > { %1494 = vst [vmem:[#allocation3 + $0xc0] sm:$0xff] %v1462_v18  ;;  %v1925_v56 = vadd.f32 %v1882_v35, %v1555_v44  ;;  %v1530_v44 = vld [vmem:[#allocation4 + $0x8] sm:$0xff] }
 0x364   : > { %v1562_v52 = vmul.f32 %v3044_v11, %v1530_v44 }
 0x365   : > { %1957 = vst [vmem:[#allocation4 + $0xa8] sm:$0xff] %v1925_v56 }
 0x367   : > { %v1794_v59 = vpop.f32.mrf.mxu2 }
 0x368   : > { %v1883_v60 = vpop.f32.mrf.mxu3  ;;  %v1425_v1 = vpop.xlane.xlu0 %1424 }
 0x369   : > { %v1884_v7 = vadd.f32 %v1883_v60, %v1794_v59  ;;  %v1463_v14 = vadd.f32 %v1425_v1, %v1335_v10 }
 0x36b   : > { %v1926_v20 = vadd.f32 %v1884_v7, %v1556_v30  ;;  %1495 = vst [vmem:[#allocation3 + $0xb8] sm:$0xff] %v1463_v14 }
 0x36d   : > { %1958 = vst [vmem:[#allocation4 + $0xf0] sm:$0xff] %v1926_v20 }
 0x36f   : > { %v1797_v39 = vpop.f32.mrf.mxu2 }
 0x370   : > { %v1428_v34 = vpop.xlane.xlu1 %1427  ;;  %v1886_v2 = vpop.f32.mrf.mxu3 }
 0x371   : > { %v1464_v48 = vadd.f32 %v1428_v34, %v1336_v31  ;;  %v1887_v54 = vadd.f32 %v1886_v2, %v1797_v39 }
 0x373   : > { %1496 = vst [vmem:[#allocation3] sm:$0xff] %v1464_v48  ;;  %v1927_v55 = vadd.f32 %v1887_v54, %v1557_v9 }
 0x375   : > { %1959 = vst [vmem:[#allocation4 + $0x50] sm:$0xff] %v1927_v55 }
 0x377   : > { %v1799_v26 = vpop.f32.mrf.mxu2 }
 0x378   : > { %v1888_v46 = vpop.f32.mrf.mxu3  ;;  %v1431_v4 = vpop.xlane.xlu2 %1430 }
 0x379   : > { %v1889_v57 = vadd.f32 %v1888_v46, %v1799_v26  ;;  %v1465_v5 = vadd.f32 %v1431_v4, %v1337_v29 }
 0x37b   : > { %v1928_v40 = vadd.f32 %v1889_v57, %v1558_v32  ;;  %1497 = vst [vmem:[#allocation3 + $0x28] sm:$0xff] %v1465_v5 }
 0x37d   : > { %1960 = vst [vmem:[#allocation4 + $0x88] sm:$0xff] %v1928_v40 }
 0x37f   : > { %v1802_v49 = vpop.f32.mrf.mxu2 }
 0x380   : > { %v1434_v13 = vpop.xlane.xlu0 %1433  ;;  %v1891_v22 = vpop.f32.mrf.mxu3 }
 0x381   : > { %v1466_v12 = vadd.f32 %v1434_v13, %v1338_v21  ;;  %v1892_v43 = vadd.f32 %v1891_v22, %v1802_v49 }
 0x383   : > { %1498 = vst [vmem:[#allocation3 + $0x98] sm:$0xff] %v1466_v12  ;;  %v1929_v8 = vadd.f32 %v1892_v43, %v1559_v15 }
 0x385   : > { %1961 = vst [vmem:[#allocation4 + $0xc8] sm:$0xff] %v1929_v8 }
 0x387   : > { %v1804_v25 = vpop.f32.mrf.mxu2 }
 0x388   : > { %v1893_v62 = vpop.f32.mrf.mxu3 }
 0x389   : > { %v1894_v41 = vadd.f32 %v1893_v62, %v1804_v25 }
 0x38b   : > { %v1930_v58 = vadd.f32 %v1894_v41, %v1560_v0 }
 0x38d   : > { %1962 = vst [vmem:[#allocation4 + $0x98] sm:$0xff] %v1930_v58 }
 0x38f   : > { %v1807_v18 = vpop.f32.mrf.mxu2 }
 0x390   : > { %v1896_v38 = vpop.f32.mrf.mxu3 }
 0x391   : > { %v1897_v36 = vadd.f32 %v1896_v38, %v1807_v18 }
 0x393   : > { %v1931_v33 = vadd.f32 %v1897_v36, %v1561_v27 }
 0x395   : > { %1963 = vst [vmem:[#allocation4 + $0x60] sm:$0xff] %v1931_v33 }
 0x397   : > { %v1809_v35 = vpop.f32.mrf.mxu2 }
 0x398   : > { %v1898_v56 = vpop.f32.mrf.mxu3 }
 0x399   : > { %v1899_v51 = vadd.f32 %v1898_v56, %v1809_v35  ;;  %2000 = sbr.rel (%p2506_p6) target bundleno = 970 (0x3ca), region = 52 }
 0x39b   : > { %v1932_v53 = vadd.f32 %v1899_v51, %v1562_v52 }
 0x39d   : > { %1964 = vst [vmem:[#allocation4 + $0x8] sm:$0xff] %v1932_v53 }
 0x39e   : > { %v2001_v59 = vld [vmem:[#allocation3 + $0x80] sm:$0xff]  ;;  %v2002_v10 = vld [vmem:[#allocation3 + $0xc8] sm:$0xff]  ;;  %v2004_v1 = vld [vmem:[#allocation3 + $0x78] sm:$0xff] }
 0x39f   : > { %3045 = vrcp.f32 %v2001_v59  ;;  %v2003_v60 = vld [vmem:[#allocation3 + $0xe8] sm:$0xff]  ;;  %v2006_v7 = vld [vmem:[#allocation3 + $0x90] sm:$0xff]  ;;  %v2007_v14 = vld [vmem:[#allocation3 + $0x58] sm:$0xff] }
 0x3a0   : > { %3047 = vrcp.f32 %v2002_v10  ;;  %v2005_v30 = vld [vmem:[#allocation3 + $0x8] sm:$0xff]  ;;  %v2065_v19 = vld [vmem:[#allocation4 + $0xb0] sm:$0xff]  ;;  %v2066_v24 = vld [vmem:[#allocation4 + $0xb8] sm:$0xff] }
 0x3a1   : > { %3049 = vrcp.f32 %v2003_v60  ;;  %v2008_v23 = vld [vmem:[#allocation3 + $0xa8] sm:$0xff]  ;;  %v2009_v16 = vld [vmem:[#allocation3 + $0xd0] sm:$0xff]  ;;  %v2067_v20 = vld [vmem:[#allocation4 + $0xc0] sm:$0xff] }
 0x3a2   : > { %3051 = vrcp.f32 %v2004_v1  ;;  %v2010_v3 = vld [vmem:[#allocation3 + $0xb0] sm:$0xff]  ;;  %v2011_v34 = vld [vmem:[#allocation3 + $0x38] sm:$0xff]  ;;  %v2069_v61 = vld [vmem:[#allocation4 + $0x28] sm:$0xff] }
 0x3a3   : > { %3053 = vrcp.f32 %v2005_v30  ;;  %v2068_v39 = vld [vmem:[#allocation4 + $0x10] sm:$0xff]  ;;  %v2012_v9 = vld [vmem:[#allocation3 + $0x40] sm:$0xff]  ;;  %v2072_v5 = vld [vmem:[#allocation4 + $0x68] sm:$0xff] }
 0x3a4   : > { %3055 = vrcp.f32 %v2006_v7  ;;  %v2070_v37 = vld [vmem:[#allocation4 + $0x30] sm:$0xff]  ;;  %v2013_v28 = vld [vmem:[#allocation3 + $0xe0] sm:$0xff]  ;;  %v2015_v11 = vld [vmem:[#allocation3 + $0x18] sm:$0xff] }
 0x3a5   : > { %v3046_v42 = vpop.eup %3045  ;;  %3057 = vrcp.f32 %v2007_v14  ;;  %v2071_v46 = vld [vmem:[#allocation4 + $0xd0] sm:$0xff]  ;;  %v2014_v4 = vld [vmem:[#allocation3 + $0x60] sm:$0xff]  ;;  %v2073_v21 = vld [vmem:[#allocation4 + $0x58] sm:$0xff] }
 0x3a6   : > { %v3048_v45 = vpop.eup %3047  ;;  %v2097_v31 = vmul.f32 %v3046_v42, %v2065_v19  ;;  %3059 = vrcp.f32 %v2008_v23  ;;  %v2016_v49 = vld [vmem:[#allocation3 + $0x68] sm:$0xff]  ;;  %v2074_v12 = vld [vmem:[#allocation4] sm:$0xff]  ;;  %v2017_v15 = vld [vmem:[#allocation3 + $0x10] sm:$0xff] }
 0x3a7   : > { %v3050_v2 = vpop.eup %3049  ;;  %v2098_v48 = vmul.f32 %v3048_v45, %v2066_v24  ;;  %3061 = vrcp.f32 %v2009_v16  ;;  %v2075_v25 = vld [vmem:[#allocation4 + $0x48] sm:$0xff]  ;;  %v2018_v62 = vld [vmem:[#allocation3 + $0x70] sm:$0xff]  ;;  %v2076_v58 = vld [vmem:[#allocation4 + $0x40] sm:$0xff] }
 0x3a8   : > { %v3052_v54 = vpop.eup %3051  ;;  %v2099_v55 = vmul.f32 %v3050_v2, %v2067_v20  ;;  %3063 = vrcp.f32 %v2010_v3  ;;  %v2019_v50 = vld [vmem:[#allocation3 + $0x50] sm:$0xff]  ;;  %v2077_v36 = vld [vmem:[#allocation4 + $0x78] sm:$0xff]  ;;  %v2020_v33 = vld [vmem:[#allocation3 + $0xa0] sm:$0xff] }
 0x3a9   : > { %v3054_v47 = vpop.eup %3053  ;;  %v2612_v26 = vpack.c.bf16 %v2098_v48, %v2097_v31  ;;  %v2100_v29 = vmul.f32 %v3052_v54, %v2068_v39  ;;  %3065 = vrcp.f32 %v2011_v34  ;;  %v2078_v56 = vld [vmem:[#allocation4 + $0xd8] sm:$0xff]  ;;  %v2079_v10 = vld [vmem:[#allocation4 + $0xe0] sm:$0xff]  ;;  %v2022_v60 = vld [vmem:[#allocation3 + $0x30] sm:$0xff] }
 0x3aa   : > { %v3056_v32 = vpop.eup %3055  ;;  %v2101_v57 = vmul.f32 %v3054_v47, %v2069_v61  ;;  %3067 = vrcp.f32 %v2012_v9  ;;  %v2021_v52 = vld [vmem:[#allocation3 + $0xd8] sm:$0xff]  ;;  %v2080_v7 = vld [vmem:[#allocation4 + $0x80] sm:$0xff]  ;;  %v2024_v42 = vld [vmem:[#allocation3 + $0xf0] sm:$0xff] }
 0x3ab   : > { %v3058_v40 = vpop.eup %3057  ;;  %2613 = vst [vmem:[%s3608_s19] sm:$0xff] %v2612_v26   ;;  %v2617_v63 = vpack.c.bf16 %v2100_v29, %v2099_v55  ;;  %v2102_v17 = vmul.f32 %v3056_v32, %v2070_v37  ;;  %3069 = vrcp.f32 %v2013_v28  ;;  %v2023_v14 = vld [vmem:[#allocation3 + $0x20] sm:$0xff]  ;;  %v2082_v45 = vld [vmem:[#allocation4 + $0x18] sm:$0xff]  ;;  %v2025_v31 = vld [vmem:[#allocation3 + $0x88] sm:$0xff] }
 0x3ac   : > { %v3060_v13 = vpop.eup %3059  ;;  %v2103_v22 = vmul.f32 %v3058_v40, %v2071_v46  ;;  %3071 = vrcp.f32 %v2014_v4  ;;  %v2081_v16 = vld [vmem:[#allocation4 + $0xa0] sm:$0xff]  ;;  %v2083_v48 = vld [vmem:[#allocation4 + $0xf8] sm:$0xff]  ;;  %v2026_v61 = vld [vmem:[#allocation3 + $0x48] sm:$0xff] }
 0x3ad   : > { %v3062_v43 = vpop.eup %3061  ;;  %2704 = vst [vmem:[%s3608_s19 + $0x8] sm:$0xff] %v2617_v63   ;;  %v2622_v8 = vpack.c.bf16 %v2102_v17, %v2101_v57  ;;  %v2104_v6 = vmul.f32 %v3060_v13, %v2072_v5  ;;  %3073 = vrcp.f32 %v2015_v11  ;;  %v2084_v55 = vld [vmem:[#allocation4 + $0xe8] sm:$0xff]  ;;  %v2027_v37 = vld [vmem:[#allocation3 + $0xf8] sm:$0xff]  ;;  %v2085_v29 = vld [vmem:[#allocation4 + $0x90] sm:$0xff] }
 0x3ae   : > { %v3064_v0 = vpop.eup %3063  ;;  %v2105_v41 = vmul.f32 %v3062_v43, %v2073_v21  ;;  %3075 = vrcp.f32 %v2016_v49  ;;  %v2028_v46 = vld [vmem:[#allocation3 + $0xc0] sm:$0xff]  ;;  %v2029_v5 = vld [vmem:[#allocation3 + $0xb8] sm:$0xff] }
 0x3af   : > { %v3066_v18 = vpop.eup %3065  ;;  %2705 = vst [vmem:[%s3608_s19 + $0x10] sm:$0xff] %v2622_v8   ;;  %v2627_v38 = vpack.c.bf16 %v2104_v6, %v2103_v22  ;;  %v2106_v27 = vmul.f32 %v3064_v0, %v2074_v12  ;;  %3077 = vrcp.f32 %v2017_v15  ;;  %v2086_v57 = vld [vmem:[#allocation4 + $0x20] sm:$0xff]  ;;  %v2087_v17 = vld [vmem:[#allocation4 + $0x38] sm:$0xff]  ;;  %v2088_v22 = vld [vmem:[#allocation4 + $0x70] sm:$0xff] }
 0x3b0   : > { %v3068_v44 = vpop.eup %3067  ;;  %v2107_v35 = vmul.f32 %v3066_v18, %v2075_v25  ;;  %3079 = vrcp.f32 %v2018_v62  ;;  %v2030_v21 = vld [vmem:[#allocation3] sm:$0xff]  ;;  %v2031_v12 = vld [vmem:[#allocation3 + $0x28] sm:$0xff]  ;;  %v2032_v25 = vld [vmem:[#allocation3 + $0x98] sm:$0xff] }
 0x3b1   : > { %v3070_v51 = vpop.eup %3069  ;;  %2706 = vst [vmem:[%s3608_s19 + $0x18] sm:$0xff] %v2627_v38   ;;  %v2632_v53 = vpack.c.bf16 %v2106_v27, %v2105_v41  ;;  %v2108_v59 = vmul.f32 %v3068_v44, %v2076_v58  ;;  %3081 = vrcp.f32 %v2019_v50  ;;  %v2089_v6 = vld [vmem:[#allocation4 + $0xa8] sm:$0xff]  ;;  %v2090_v41 = vld [vmem:[#allocation4 + $0xf0] sm:$0xff] }
 0x3b2   : > { %v3072_v1 = vpop.eup %3071  ;;  %v2109_v30 = vmul.f32 %v3070_v51, %v2077_v36  ;;  %3083 = vrcp.f32 %v2020_v33  ;;  %v2091_v38 = vld [vmem:[#allocation4 + $0x50] sm:$0xff]  ;;  %v2092_v33 = vld [vmem:[#allocation4 + $0x88] sm:$0xff] }
 0x3b3   : > { %v3074_v19 = vpop.eup %3073  ;;  %2707 = vst [vmem:[%s3608_s19 + $0x20] sm:$0xff] %v2632_v53   ;;  %v2637_v23 = vpack.c.bf16 %v2108_v59, %v2107_v35  ;;  %v2110_v24 = vmul.f32 %v3072_v1, %v2078_v56  ;;  %3085 = vrcp.f32 %v2021_v52  ;;  %v2093_v52 = vld [vmem:[#allocation4 + $0xc8] sm:$0xff]  ;;  %v2094_v59 = vld [vmem:[#allocation4 + $0x98] sm:$0xff] }
 0x3b4   : > { %v3076_v20 = vpop.eup %3075  ;;  %v2111_v3 = vmul.f32 %v3074_v19, %v2079_v10  ;;  %3087 = vrcp.f32 %v2022_v60  ;;  %v2096_v19 = vld [vmem:[#allocation4 + $0x8] sm:$0xff] }
 0x3b5   : > { %v3078_v39 = vpop.eup %3077  ;;  %2708 = vst [vmem:[%s3608_s19 + $0x28] sm:$0xff] %v2637_v23   ;;  %v2642_v34 = vpack.c.bf16 %v2110_v24, %v2109_v30  ;;  %v2112_v2 = vmul.f32 %v3076_v20, %v2080_v7  ;;  %3089 = vrcp.f32 %v2023_v14  ;;  %v2095_v30 = vld [vmem:[#allocation4 + $0x60] sm:$0xff] }
 0x3b6   : > { %v3080_v9 = vpop.eup %3079  ;;  %v2113_v54 = vmul.f32 %v3078_v39, %v2081_v16  ;;  %3091 = vrcp.f32 %v2024_v42 }
 0x3b7   : > { %v3082_v28 = vpop.eup %3081  ;;  %2709 = vst [vmem:[%s3608_s19 + $0x30] sm:$0xff] %v2642_v34   ;;  %v2647_v47 = vpack.c.bf16 %v2112_v2, %v2111_v3  ;;  %v2114_v26 = vmul.f32 %v3080_v9, %v2082_v45  ;;  %3093 = vrcp.f32 %v2025_v31 }
 0x3b8   : > { %v3084_v4 = vpop.eup %3083  ;;  %v2115_v32 = vmul.f32 %v3082_v28, %v2083_v48  ;;  %3095 = vrcp.f32 %v2026_v61 }
 0x3b9   : > { %v3086_v11 = vpop.eup %3085  ;;  %2710 = vst [vmem:[%s3608_s19 + $0x38] sm:$0xff] %v2647_v47   ;;  %v2652_v40 = vpack.c.bf16 %v2114_v26, %v2113_v54  ;;  %v2116_v63 = vmul.f32 %v3084_v4, %v2084_v55  ;;  %3097 = vrcp.f32 %v2027_v37 }
 0x3ba   : > { %v3088_v49 = vpop.eup %3087  ;;  %v2117_v13 = vmul.f32 %v3086_v11, %v2085_v29  ;;  %3099 = vrcp.f32 %v2028_v46 }
 0x3bb   : > { %v3090_v15 = vpop.eup %3089  ;;  %2711 = vst [vmem:[%s3608_s19 + $0x40] sm:$0xff] %v2652_v40   ;;  %v2657_v43 = vpack.c.bf16 %v2116_v63, %v2115_v32  ;;  %v2118_v8 = vmul.f32 %v3088_v49, %v2086_v57  ;;  %3101 = vrcp.f32 %v2029_v5 }
 0x3bc   : > { %v3092_v62 = vpop.eup %3091  ;;  %v2119_v0 = vmul.f32 %v3090_v15, %v2087_v17  ;;  %3103 = vrcp.f32 %v2030_v21 }
 0x3bd   : > { %v3094_v58 = vpop.eup %3093  ;;  %2712 = vst [vmem:[%s3608_s19 + $0x48] sm:$0xff] %v2657_v43   ;;  %v2662_v50 = vpack.c.bf16 %v2118_v8, %v2117_v13  ;;  %v2120_v18 = vmul.f32 %v3092_v62, %v2088_v22  ;;  %3105 = vrcp.f32 %v2031_v12 }
 0x3be   : > { %v3096_v27 = vpop.eup %3095  ;;  %v2121_v36 = vmul.f32 %v3094_v58, %v2089_v6  ;;  %3107 = vrcp.f32 %v2032_v25 }
 0x3bf   : > { %v3098_v44 = vpop.eup %3097  ;;  %2713 = vst [vmem:[%s3608_s19 + $0x50] sm:$0xff] %v2662_v50   ;;  %v2667_v35 = vpack.c.bf16 %v2120_v18, %v2119_v0  ;;  %v2122_v56 = vmul.f32 %v3096_v27, %v2090_v41 }
 0x3c0   : > { %v3100_v51 = vpop.eup %3099  ;;  %v2123_v53 = vmul.f32 %v3098_v44, %v2091_v38 }
 0x3c1   : > { %v3102_v10 = vpop.eup %3101  ;;  %2714 = vst [vmem:[%s3608_s19 + $0x58] sm:$0xff] %v2667_v35   ;;  %v2672_v60 = vpack.c.bf16 %v2122_v56, %v2121_v36  ;;  %v2124_v1 = vmul.f32 %v3100_v51, %v2092_v33 }
 0x3c2   : > { %v3104_v7 = vpop.eup %3103  ;;  %v2125_v14 = vmul.f32 %v3102_v10, %v2093_v52 }
 0x3c3   : > { %v3106_v23 = vpop.eup %3105  ;;  %2715 = vst [vmem:[%s3608_s19 + $0x60] sm:$0xff] %v2672_v60   ;;  %v2677_v24 = vpack.c.bf16 %v2124_v1, %v2123_v53  ;;  %v2126_v16 = vmul.f32 %v3104_v7, %v2094_v59 }
 0x3c4   : > { %v3108_v42 = vpop.eup %3107  ;;  %v2127_v20 = vmul.f32 %v3106_v23, %v2095_v30 }
 0x3c5   : > { %2716 = vst [vmem:[%s3608_s19 + $0x68] sm:$0xff] %v2677_v24   ;;  %v2682_v3 = vpack.c.bf16 %v2126_v16, %v2125_v14  ;;  %v2128_v45 = vmul.f32 %v3108_v42, %v2096_v19 }
 0x3c7   : > { %2717 = vst [vmem:[%s3608_s19 + $0x70] sm:$0xff] %v2682_v3   ;;  %v2687_v31 = vpack.c.bf16 %v2128_v45, %v2127_v20 }
 0x3c9   : > { %2718 = vst [vmem:[%s3608_s19 + $0x78] sm:$0xff] %v2687_v31  }
 0x3ca PF: > { %s4839_s18 = sld [smem:[#allocation19_spill]]  ;;  %s2208_s16 = sshll.u32 %s3608_s19, 4  ;;  %s2209_s16 = int_to_ptr.vmem [resolvable:$true] %s2208_s16 }
 0x3cb   : > { %s4840_s4 = sld [smem:[#allocation20_spill]]  ;;  %s2194_s29 = scalar_lea.sflag [#allocation7], %s3588_s22 }
 0x3cc   : > { %s4842_s28 = sld [smem:[#allocation62_spill]] }
 0x3d0   : > { %s2508_s13 = sshll.u32 %s4839_s18, 5 }
 0x3d1   : > { %s2509_s1 = sshll.u32 %s4840_s4, 6 }
 0x3d2   : > { %s2205_s12 = sadd.s32 %s2509_s1, %s2508_s13  ;;  %s3219_s19 = scalar_lea.hbm %s4842_s28, 2048 }
 0x3d3   : > { %s2510_s5 = sshll.u32 %s2205_s12, 2 }
 0x3d4   : > { %s2207_s11 = scalar_lea.hbm %s4842_s28, %s2510_s5 }
 0x3d5   : > { %s2210_s9 = sshll.u32 %s2207_s11, 4  ;;  %s2211_s9 = int_to_ptr.hbm [resolvable:$true] %s2210_s9 }
 0x3d6   : > { %s3213_s3 = sshra.s32 %s2211_s9, 4  ;;  %s3214_s3 = int_to_ptr.hbm [resolvable:$true] %s3213_s3 }
 0x3d7   : > { %s3215_s8 = scalar_lea.hbm %s3214_s3, 128  ;;  %p3220_p5 = scmp.lt.s32.totalorder %s3214_s3, %s4842_s28 }
 0x3d8   : > { %p3216_p8 = scmp.ne.s32.totalorder %s3214_s3, %s3215_s8  ;;  %p3221_p9 = scmp.lt.s32.totalorder %s3219_s19, %s3215_s8 }
 0x3da   : > { %p3217_p11 = pnand %p3216_p8, %p3537_p0  ;;  %p3222_p1 = por %p3221_p9, %p3220_p5 }
 0x3dc   : > { %p3218_p4 = pneg %p3217_p11 }
 0x3de   : > { %p3223_p10 = pnand %p3222_p1, %p3218_p4 }
 0x3e0   : > { %3226 = shalt.err (!%p3223_p10)
}
 0x3e1   : > { %s3347_s22 = smov 64   ;;  %s3348_s18 = smov 4  }
 0x3e2   : > { %2725 = dma.vmem_to_hbm [thread:$0]  (%p3537_p0), %s2209_s16, 2048, %s2211_s9, %s2194_s29, %s3347_s22, %s3347_s22, %s3348_s18  }
 0x3e3 PF: > { %s4843_s4 = sld [smem:[#allocation16_spill]]  ;;  %p2742_p12 = scmp.ge.s32.totalorder %s3341_s24, 2 }
 0x3e5   : > { %p2738_p3 = pnand %p2742_p12, %p3548_p2 }
 0x3e7   : > { %p2739_p13 = pneg %p2738_p3 }
 0x3e9   : > { %s2225_s1 = sand.u32 1, %s4843_s4  }
 0x3ea   : > { %s2226_s12 = scalar_lea.sflag [#allocation7], %s2225_s1 }
 0x3eb   : > { %3288 = dma.done.wait (%p2739_p13), %s2226_s12, 2048  }
 0x3ec   : > { %3290 = vsyncadd (%p2739_p13), %s2226_s12, 4294965248  ;;  %s22_s24 = sadd.s32 1, %s3341_s24   ;;  %s4846_s12 = sld [smem:[#allocation15_spill]] }
 0x3ed   : > { %p4591_p7 = scmp.ge.s32.totalorder %s22_s24, 34   ;;  %s4847_s30 = sld [smem:[#allocation17_spill]] }
 0x3ee   : > { %s4848_s10 = smov %s3560_s15  ;;  %s4849_s19 = sld [smem:[#allocation21_spill]] }
 0x3ef   : > { %s4850_s22 = sld [smem:[#allocation26_spill]]  ;;  %s4852_s13 = smov %s3301_s14 }
 0x3f0   : > { %s4851_s7 = sld [smem:[#allocation28_spill]]  ;;  %s4853_s14 = smov %s3565_s25 }
 0x3f1   : > { %s4855_s16 = smov %s3313_s17  ;;  %s4856_s17 = smov %s4848_s10 }
 0x3f2   : > { %s4857_s18 = smov %s3329_s21  ;;  %s4858_s20 = smov %s3337_s23 }
 0x3f3   : > { %s4854_s15 = smov %s4847_s30  ;;  %s4859_s21 = smov %s4862_s26 }
 0x3f4   :  { %21 = sbr.rel (!%p4591_p7) target bundleno = 16 (0x10), region = 109 }
 0x3f6   : > { %s4860_s23 = smov %s4851_s7 }
 0x3f9   :  { %2232 = vsyncpa [#allocation6], 1 }
 0x3fa   :  { %2234 = vsyncpa [#allocation6 + $0x1], 1 }
 0x3fb   :  { %2235 = vsyncpa [#allocation9], 1 }
 0x3fc   :  { %2237 = vsyncpa [#allocation9 + $0x1], 1 }
 0x3fd   :  { %2238 = vsyncpa [#allocation7], 1 }
 0x3fe   :  { %2240 = vsyncpa [#allocation7 + $0x1], 1 }

</bundles_post_ra>
